<compile_context>
chip_gen: v5e
topology: v5e:2x2
jax: 0.10.0
libtpu: 0.0.40
codegen_flags: <defaults>
</compile_context>

<pallas_src>
import jax
import jax.numpy as jnp
from jax.experimental import pallas as pl
from jax.experimental.pallas import tpu as pltpu

# ----------------------------- model hyperparams -----------------------------
BERT_DIM = 768
EMBEDDING_DIM = 32
CAT_VOCAB_SIZES = [7, 11, 13]           # 3 categorical features
HIER_VOCAB_SIZES = [5, 6, 7, 8, 9, 10]  # 6 hierarchical features
NUM_CLASSES = 10
HIDDEN_DIM1 = 512
HIDDEN_DIM2 = 256
BN_EPS = 1e-5

TOTAL_INPUT_DIM = BERT_DIM + EMBEDDING_DIM * len(CAT_VOCAB_SIZES) \
    + EMBEDDING_DIM * len(HIER_VOCAB_SIZES) + 1           # 1057
PADDED_INPUT_DIM = 1152                                    # next multiple of 128
PADDED_OUT_DIM = 128                                       # lane-dense fc3 output
MAX_BLOCK_M = 1024                                         # batch tile upper bound
MIN_TWO_TILE_BATCH = 64                                    # split for megacore above this


def _round_up(x, m):
    return (x + m - 1) // m * m


def _cdiv(a, b):
    return (a + b - 1) // b


def _choose_tiling(batch):
    """Pick (bm, bpad): minimize padding waste, keep >=2 tiles for v7x megacore."""
    n_tiles = max(1, _cdiv(batch, MAX_BLOCK_M))
    if batch >= MIN_TWO_TILE_BATCH:
        n_tiles = max(n_tiles, 2)                 # keep both v7x TensorCores busy
    bm = min(MAX_BLOCK_M, _round_up(_cdiv(batch, n_tiles), 16))  # bf16 sublane mult
    bpad = _round_up(batch, bm)
    return bm, bpad


# --------------------------------- kernel ------------------------------------
def _mlp_head_kernel(x_ref,
                     w1_ref, t1_ref,
                     w2_ref, t2_ref,
                     w3_ref, b3_ref,
                     o_ref):
    """fc1 -> BN1 -> ReLU -> fc2 -> BN2 -> ReLU -> fc3 on one batch tile.

    Weights (with BN scales pre-folded into their columns) are bf16, the MXU
    accumulates in f32; BN shift + linear bias are pre-folded into t1/t2.
    """
    x = x_ref[...]                                                  # [bm, 1152] bf16

    # fc1 + folded(BN1, b1) + ReLU
    h1 = jnp.dot(x, w1_ref[...], preferred_element_type=jnp.float32)
    h1 = jnp.maximum(h1 + t1_ref[...], 0.0)                        # [bm, 512] f32

    # fc2 + folded(BN2, b2) + ReLU
    h2 = jnp.dot(h1.astype(jnp.bfloat16), w2_ref[...],
                 preferred_element_type=jnp.float32)
    h2 = jnp.maximum(h2 + t2_ref[...], 0.0)                        # [bm, 256] f32

    # fc3 (logits), N padded to 128 lanes, stored bf16 (halves writeback DMA)
    logits = jnp.dot(h2.astype(jnp.bfloat16), w3_ref[...],
                     preferred_element_type=jnp.float32)
    o_ref[...] = (logits + b3_ref[...]).astype(o_ref.dtype)        # [bm, 128] bf16


@jax.jit
def mlp_head_pallas(x_pad, head):
    """x_pad: [B, 1152] bf16.  Returns logits [B, NUM_CLASSES] f32."""
    batch = x_pad.shape[0]
    bm, bpad = _choose_tiling(batch)
    if bpad != batch:
        x_pad = jnp.pad(x_pad, ((0, bpad - batch), (0, 0)))
    grid = (bpad // bm,)

    const = lambda i: (0, 0)                          # weights resident across tiles
    single = pl.Buffered(1)                           # const blocks never re-DMA

    flops = 2 * bpad * (PADDED_INPUT_DIM * HIDDEN_DIM1
                        + HIDDEN_DIM1 * HIDDEN_DIM2
                        + HIDDEN_DIM2 * PADDED_OUT_DIM)
    bytes_accessed = (
        bpad * PADDED_INPUT_DIM * 2                               # x bf16
        + PADDED_INPUT_DIM * HIDDEN_DIM1 * 2                      # w1 bf16
        + HIDDEN_DIM1 * HIDDEN_DIM2 * 2                           # w2 bf16
        + HIDDEN_DIM2 * PADDED_OUT_DIM * 2                        # w3 bf16
        + (HIDDEN_DIM1 + HIDDEN_DIM2 + PADDED_OUT_DIM) * 4        # t1/t2/b3 f32
        + bpad * PADDED_OUT_DIM * 2)                              # out bf16

    out = pl.pallas_call(
        _mlp_head_kernel,
        out_shape=jax.ShapeDtypeStruct((bpad, PADDED_OUT_DIM), jnp.bfloat16),
        grid=grid,
        in_specs=[
            pl.BlockSpec((bm, PADDED_INPUT_DIM), lambda i: (i, 0)),        # x tile
            pl.BlockSpec((PADDED_INPUT_DIM, HIDDEN_DIM1), const,
                         pipeline_mode=single),                            # w1*s1 bf16
            pl.BlockSpec((1, HIDDEN_DIM1), const),                         # t1
            pl.BlockSpec((HIDDEN_DIM1, HIDDEN_DIM2), const,
                         pipeline_mode=single),                            # w2*s2 bf16
            pl.BlockSpec((1, HIDDEN_DIM2), const),                         # t2
            pl.BlockSpec((HIDDEN_DIM2, PADDED_OUT_DIM), const,
                         pipeline_mode=single),                            # w3 bf16
            pl.BlockSpec((1, PADDED_OUT_DIM), const),                      # b3
        ],
        out_specs=pl.BlockSpec((bm, PADDED_OUT_DIM), lambda i: (i, 0)),
        compiler_params=pltpu.CompilerParams(
            dimension_semantics=("parallel",)),        # megacore / v7x dual-TC
        cost_estimate=pl.CostEstimate(flops=flops, transcendentals=0,
                                      bytes_accessed=bytes_accessed),
    )(
        x_pad,
        head["w1"], head["t1"],
        head["w2"], head["t2"],
        head["w3"], head["b3"],
    )
    return out[:batch, :NUM_CLASSES].astype(jnp.float32)


# ------------------------------ parameter init --------------------------------
def init_params(key):
    ks = jax.random.split(key, 16)
    p = {}
    # embeddings (N(0,1) like torch.nn.Embedding default)
    p["cat_emb"] = [jax.random.normal(ks[i], (v, EMBEDDING_DIM), jnp.float32)
                    for i, v in enumerate(CAT_VOCAB_SIZES)]
    p["hier_emb"] = [jax.random.normal(ks[3 + i], (v, EMBEDDING_DIM), jnp.float32)
                     for i, v in enumerate(HIER_VOCAB_SIZES)]
    # stand-in "BERT" token embedding table for deterministic bert_cls glue
    p["tok_emb"] = 0.02 * jax.random.normal(ks[14], (1000, BERT_DIM), jnp.float32)

    def linear(k, fan_in, fan_out):
        bound = 1.0 / jnp.sqrt(fan_in)
        kw, kb = jax.random.split(k)
        w = jax.random.uniform(kw, (fan_in, fan_out), jnp.float32, -bound, bound)
        b = jax.random.uniform(kb, (1, fan_out), jnp.float32, -bound, bound)
        return w, b

    def bn(k, dim):
        kg, kb, km, kv = jax.random.split(k, 4)
        gamma = 1.0 + 0.01 * jax.random.normal(kg, (1, dim), jnp.float32)
        beta = 0.01 * jax.random.normal(kb, (1, dim), jnp.float32)
        mean = 0.01 * jax.random.normal(km, (1, dim), jnp.float32)
        var = jnp.abs(1.0 + 0.01 * jax.random.normal(kv, (1, dim), jnp.float32))
        scale = gamma / jnp.sqrt(var + BN_EPS)
        shift = beta - mean * scale
        return scale, shift

    w1, b1 = linear(ks[9], TOTAL_INPUT_DIM, HIDDEN_DIM1)
    w2, b2 = linear(ks[10], HIDDEN_DIM1, HIDDEN_DIM2)
    w3, b3 = linear(ks[11], HIDDEN_DIM2, NUM_CLASSES)
    s1, sh1 = bn(ks[12], HIDDEN_DIM1)
    s2, sh2 = bn(ks[13], HIDDEN_DIM2)

    # Kernel-ready head parameters:
    #   - BN scale folded into weight columns (f32 multiply, then bf16 cast);
    #     BN shift + linear bias folded into t*:  BN(xW + b) = x(W*s) + (shift + b*s).
    #   - W1 zero-padded along K so the padded-input matmul is exact (zero rows
    #     stay exactly zero after the per-column scale and bf16 cast).
    #   - W3/b3 zero-padded along N to 128 lanes (slice back in the wrapper).
    #   - Weights in bf16 (halves the dominant weight DMA), shifts/bias in f32.
    w1s = jnp.pad(w1 * s1, ((0, PADDED_INPUT_DIM - TOTAL_INPUT_DIM), (0, 0)))
    p["head"] = {
        "w1": w1s.astype(jnp.bfloat16),
        "t1": sh1 + b1 * s1,
        "w2": (w2 * s2).astype(jnp.bfloat16),
        "t2": sh2 + b2 * s2,
        "w3": jnp.pad(w3, ((0, 0), (0, PADDED_OUT_DIM - NUM_CLASSES))
                      ).astype(jnp.bfloat16),
        "b3": jnp.pad(b3, ((0, 0), (0, PADDED_OUT_DIM - NUM_CLASSES))),
    }
    return p


# --------------------------------- forward ------------------------------------
def forward(params, input_ids, attention_mask, cat_features, hier_features, amount):
    """Glue (embedding gathers, concat, padding) + Pallas MLP-head kernel."""
    # --- BERT stand-in: masked mean-pool of a token embedding table ----------
    # TODO(synk): real BERT encoder not implemented; deterministic pooling proxy.
    tok = jnp.take(params["tok_emb"], input_ids, axis=0)            # [B, S, 768]
    mask = attention_mask[..., None].astype(jnp.float32)
    bert_cls = (tok * mask).sum(1) / jnp.maximum(mask.sum(1), 1.0)  # [B, 768]

    # --- categorical / hierarchical embedding lookups (tiny gathers) ---------
    cat_emb = jnp.concatenate(
        [jnp.take(params["cat_emb"][i], cat_features[:, i], axis=0)
         for i in range(len(CAT_VOCAB_SIZES))], axis=1)             # [B, 96]
    hier_emb = jnp.concatenate(
        [jnp.take(params["hier_emb"][i], hier_features[:, i], axis=0)
         for i in range(len(HIER_VOCAB_SIZES))], axis=1)            # [B, 192]

    combined = jnp.concatenate(
        [bert_cls, cat_emb, hier_emb, amount], axis=1)              # [B, 1057] f32
    # bf16 x tile (halves the dominant kernel DMA); zero-pad K to 1152.
    x_pad = jnp.pad(combined.astype(jnp.bfloat16),
                    ((0, 0), (0, PADDED_INPUT_DIM - TOTAL_INPUT_DIM)))

    return mlp_head_pallas(x_pad, params["head"]), combined


def reference_head(head, combined):
    """Pure-JAX reference mirroring the kernel's bf16 numerics."""
    f32 = jnp.float32
    x = combined.astype(jnp.bfloat16).astype(f32)
    w1 = head["w1"].astype(f32)[:TOTAL_INPUT_DIM]
    h1 = jnp.maximum(x @ w1 + head["t1"], 0.0)
    h1 = h1.astype(jnp.bfloat16).astype(f32)
    h2 = jnp.maximum(h1 @ head["w2"].astype(f32) + head["t2"], 0.0)
    h2 = h2.astype(jnp.bfloat16).astype(f32)
    logits = h2 @ head["w3"].astype(f32) + head["b3"]
    logits = logits.astype(jnp.bfloat16).astype(f32)                # kernel stores bf16
    return logits[:, :NUM_CLASSES]


# ----------------------------------- main --------------------------------------
if __name__ == "__main__":
    key = jax.random.PRNGKey(0)
    kp, k1, k2, k3, k4 = jax.random.split(key, 5)
    params = init_params(kp)

    batch, seq = 8, 16
    input_ids = jax.random.randint(k1, (batch, seq), 0, 1000, dtype=jnp.int32)
    attention_mask = jnp.ones((batch, seq), dtype=jnp.int32)
    cat_features = jnp.stack(
        [jax.random.randint(jax.random.fold_in(k2, i), (batch,), 0, v, jnp.int32)
         for i, v in enumerate(CAT_VOCAB_SIZES)], axis=1)           # [B, 3]
    hier_features = jnp.stack(
        [jax.random.randint(jax.random.fold_in(k3, i), (batch,), 0, v, jnp.int32)
         for i, v in enumerate(HIER_VOCAB_SIZES)], axis=1)          # [B, 6]
    amount = jax.random.normal(k4, (batch, 1), jnp.float32)         # [B, 1]

    logits, combined = forward(params, input_ids, attention_mask,
                               cat_features, hier_features, amount)
    logits = jax.block_until_ready(logits)

    ref = reference_head(params["head"], combined)
    assert logits.shape == (batch, NUM_CLASSES)
    assert jnp.allclose(logits, ref, atol=1e-2, rtol=1e-2), "mismatch vs reference"
    print("KERNEL_OK")
</pallas_src>

<mosaic_0001>
module attributes {stable_mosaic.version = 11 : i64} {
  func.func @_mlp_head_kernel(%arg0: i32, %arg1: memref<16x1152xbf16, #tpu.memory_space<vmem>>, %arg2: memref<1152x512xbf16, #tpu.memory_space<vmem>>, %arg3: memref<1x512xf32, #tpu.memory_space<vmem>>, %arg4: memref<512x256xbf16, #tpu.memory_space<vmem>>, %arg5: memref<1x256xf32, #tpu.memory_space<vmem>>, %arg6: memref<256x128xbf16, #tpu.memory_space<vmem>>, %arg7: memref<1x128xf32, #tpu.memory_space<vmem>>, %arg8: memref<16x128xbf16, #tpu.memory_space<vmem>>) attributes {dimension_semantics = [#tpu.dimension_semantics<parallel>], iteration_bounds = array<i64: 1>, scalar_prefetch = 0 : i64, scratch_operands = 0 : i64, tpu.core_type = #tpu.core_type<tc>, window_params = [{transform_indices = @transform_0, window_bounds = array<i64: 16, 1152>}, {pipeline_mode = #tpu.pipeline_mode<synchronous>, transform_indices = @transform_1, window_bounds = array<i64: 1152, 512>}, {pipeline_mode = #tpu.pipeline_mode<synchronous>, transform_indices = @transform_2, window_bounds = array<i64: 1, 512>}, {pipeline_mode = #tpu.pipeline_mode<synchronous>, transform_indices = @transform_3, window_bounds = array<i64: 512, 256>}, {pipeline_mode = #tpu.pipeline_mode<synchronous>, transform_indices = @transform_4, window_bounds = array<i64: 1, 256>}, {pipeline_mode = #tpu.pipeline_mode<synchronous>, transform_indices = @transform_5, window_bounds = array<i64: 256, 128>}, {pipeline_mode = #tpu.pipeline_mode<synchronous>, transform_indices = @transform_6, window_bounds = array<i64: 1, 128>}, {transform_indices = @transform_7, window_bounds = array<i64: 16, 128>}]} {
    %c0 = arith.constant 0 : index
    %c0_0 = arith.constant 0 : index
    %0 = vector.load %arg1[%c0, %c0_0] : memref<16x1152xbf16, #tpu.memory_space<vmem>>, vector<16x1152xbf16>
    %c0_1 = arith.constant 0 : index
    %c0_2 = arith.constant 0 : index
    %1 = vector.load %arg2[%c0_1, %c0_2] : memref<1152x512xbf16, #tpu.memory_space<vmem>>, vector<1152x512xbf16>
    %cst = arith.constant dense<0.000000e+00> : vector<16x512xf32>
    %2 = tpu.matmul %0, %1, %cst {dimension_numbers = #tpu.dot_dimension_numbers<[1], [0], [0], [1], [0, 0, 1, 1], [], []>} : vector<16x1152xbf16>, vector<1152x512xbf16>, vector<16x512xf32> -> vector<16x512xf32>
    %c0_3 = arith.constant 0 : index
    %c0_4 = arith.constant 0 : index
    %3 = vector.load %arg3[%c0_3, %c0_4] : memref<1x512xf32, #tpu.memory_space<vmem>>, vector<1x512xf32>
    %4 = vector.broadcast %3 : vector<1x512xf32> to vector<16x512xf32>
    %5 = arith.addf %2, %4 : vector<16x512xf32>
    %cst_5 = arith.constant 0.000000e+00 : f32
    %6 = vector.broadcast %cst_5 : f32 to vector<16x512xf32>
    %7 = arith.maximumf %5, %6 : vector<16x512xf32>
    %8 = arith.truncf %7 : vector<16x512xf32> to vector<16x512xbf16>
    %c0_6 = arith.constant 0 : index
    %c0_7 = arith.constant 0 : index
    %9 = vector.load %arg4[%c0_6, %c0_7] : memref<512x256xbf16, #tpu.memory_space<vmem>>, vector<512x256xbf16>
    %cst_8 = arith.constant dense<0.000000e+00> : vector<16x256xf32>
    %10 = tpu.matmul %8, %9, %cst_8 {dimension_numbers = #tpu.dot_dimension_numbers<[1], [0], [0], [1], [0, 0, 1, 1], [], []>} : vector<16x512xbf16>, vector<512x256xbf16>, vector<16x256xf32> -> vector<16x256xf32>
    %c0_9 = arith.constant 0 : index
    %c0_10 = arith.constant 0 : index
    %11 = vector.load %arg5[%c0_9, %c0_10] : memref<1x256xf32, #tpu.memory_space<vmem>>, vector<1x256xf32>
    %12 = vector.broadcast %11 : vector<1x256xf32> to vector<16x256xf32>
    %13 = arith.addf %10, %12 : vector<16x256xf32>
    %cst_11 = arith.constant 0.000000e+00 : f32
    %14 = vector.broadcast %cst_11 : f32 to vector<16x256xf32>
    %15 = arith.maximumf %13, %14 : vector<16x256xf32>
    %16 = arith.truncf %15 : vector<16x256xf32> to vector<16x256xbf16>
    %c0_12 = arith.constant 0 : index
    %c0_13 = arith.constant 0 : index
    %17 = vector.load %arg6[%c0_12, %c0_13] : memref<256x128xbf16, #tpu.memory_space<vmem>>, vector<256x128xbf16>
    %cst_14 = arith.constant dense<0.000000e+00> : vector<16x128xf32>
    %18 = tpu.matmul %16, %17, %cst_14 {dimension_numbers = #tpu.dot_dimension_numbers<[1], [0], [0], [1], [0, 0, 1, 1], [], []>} : vector<16x256xbf16>, vector<256x128xbf16>, vector<16x128xf32> -> vector<16x128xf32>
    %c0_15 = arith.constant 0 : index
    %c0_16 = arith.constant 0 : index
    %19 = vector.load %arg7[%c0_15, %c0_16] : memref<1x128xf32, #tpu.memory_space<vmem>>, vector<1x128xf32>
    %20 = vector.broadcast %19 : vector<1x128xf32> to vector<16x128xf32>
    %21 = arith.addf %18, %20 : vector<16x128xf32>
    %22 = arith.truncf %21 : vector<16x128xf32> to vector<16x128xbf16>
    %c0_17 = arith.constant 0 : index
    %c0_18 = arith.constant 0 : index
    %23 = vector.load %arg8[%c0_17, %c0_18] : memref<16x128xbf16, #tpu.memory_space<vmem>>, vector<16x128xbf16>
    tpu.vector_store %arg8[%c0_17, %c0_18], %22 {strides = array<i32>} : memref<16x128xbf16, #tpu.memory_space<vmem>>, vector<16x128xbf16>,
    return
  }
  func.func @transform_0(%arg0: i32) -> (i32, i32) {
    %c0_i32 = arith.constant 0 : i32
    %c0_i32_0 = arith.constant 0 : i32
    return %arg0, %c0_i32 : i32, i32
  }
  func.func @transform_1(%arg0: i32) -> (i32, i32) {
    %c0_i32 = arith.constant 0 : i32
    %c0_i32_0 = arith.constant 0 : i32
    %c0_i32_1 = arith.constant 0 : i32
    return %c0_i32, %c0_i32_0 : i32, i32
  }
  func.func @transform_2(%arg0: i32) -> (i32, i32) {
    %c0_i32 = arith.constant 0 : i32
    %c0_i32_0 = arith.constant 0 : i32
    %c0_i32_1 = arith.constant 0 : i32
    return %c0_i32, %c0_i32_0 : i32, i32
  }
  func.func @transform_3(%arg0: i32) -> (i32, i32) {
    %c0_i32 = arith.constant 0 : i32
    %c0_i32_0 = arith.constant 0 : i32
    %c0_i32_1 = arith.constant 0 : i32
    return %c0_i32, %c0_i32_0 : i32, i32
  }
  func.func @transform_4(%arg0: i32) -> (i32, i32) {
    %c0_i32 = arith.constant 0 : i32
    %c0_i32_0 = arith.constant 0 : i32
    %c0_i32_1 = arith.constant 0 : i32
    return %c0_i32, %c0_i32_0 : i32, i32
  }
  func.func @transform_5(%arg0: i32) -> (i32, i32) {
    %c0_i32 = arith.constant 0 : i32
    %c0_i32_0 = arith.constant 0 : i32
    %c0_i32_1 = arith.constant 0 : i32
    return %c0_i32, %c0_i32_0 : i32, i32
  }
  func.func @transform_6(%arg0: i32) -> (i32, i32) {
    %c0_i32 = arith.constant 0 : i32
    %c0_i32_0 = arith.constant 0 : i32
    %c0_i32_1 = arith.constant 0 : i32
    return %c0_i32, %c0_i32_0 : i32, i32
  }
  func.func @transform_7(%arg0: i32) -> (i32, i32) {
    %c0_i32 = arith.constant 0 : i32
    %c0_i32_0 = arith.constant 0 : i32
    return %arg0, %c0_i32 : i32, i32
  }
}

</mosaic_0001>

<bundles_post_ra>
// kernel: mlp_head_pallas.1
= control target key start
LH: loop header
LB: loop body
LE: loop exit
PB: predicated region body
PF: predicated region fallthrough
CT: control target
= control target key end

     0   :  { %12 = vsyncpa [#allocation3], 0  ;;  %s5432_s0 = inlined_call_operand.vmem [shape: bf16[16,1152], index: 0, kind: input, shape index: {}]   ;;  %s5433_s1 = inlined_call_operand.hbm [shape: bf16[1152,512], index: 1, kind: input, shape index: {}]   ;;  %s5434_s2 = inlined_call_operand.hbm [shape: f32[1,512], index: 2, kind: input, shape index: {}]   ;;  %s5435_s3 = inlined_call_operand.hbm [shape: bf16[512,256], index: 3, kind: input, shape index: {}]   ;;  %s5436_s4 = inlined_call_operand.hbm [shape: f32[1,256], index: 4, kind: input, shape index: {}]   ;;  %s5437_s5 = inlined_call_operand.hbm [shape: bf16[256,128], index: 5, kind: input, shape index: {}]   ;;  %s5438_s6 = inlined_call_operand.hbm [shape: f32[1,128], index: 6, kind: input, shape index: {}]   ;;  %s5439_s7 = inlined_call_operand.vmem [shape: bf16[16,128], index: 7, kind: output, shape index: {}]  }
   0x1   :  { %13 = vsyncpa [#allocation5], 0 }
   0x2   :  { %14 = vsyncpa [#allocation8], 0  ;;  %s36_s26 = sshll.u32 %s5434_s2, 4  ;;  %s37_s26 = int_to_ptr.hbm [resolvable:$true] %s36_s26 }
   0x3   :  { %15 = vsyncpa [#allocation11], 0  ;;  %s5159_s27 = smov [#allocation4]   ;;  %s60_s8 = sshll.u32 %s5436_s4, 4  ;;  %s61_s8 = int_to_ptr.hbm [resolvable:$true] %s60_s8 }
   0x4   :  { %s38_s28 = sshll.u32 %s5159_s27, 4  ;;  %s5160_s9 = smov [#allocation7]   ;;  %s39_s28 = int_to_ptr.vmem [resolvable:$true] %s38_s28 }
   0x5   :  { %41 = dma.hbm_to_vmem [thread:$0]  %s37_s26, 64, %s39_s28, [#allocation5]  }
   0x6   :  { %s62_s10 = sshll.u32 %s5160_s9, 4  ;;  %s22_s13 = sshll.u32 %s5433_s1, 4  ;;  %s63_s10 = int_to_ptr.vmem [resolvable:$true] %s62_s10  ;;  %s23_s13 = int_to_ptr.hbm [resolvable:$true] %s22_s13 }
   0x7   :  { %65 = dma.hbm_to_vmem [thread:$0]  %s61_s8, 32, %s63_s10, [#allocation8]  }
   0x8   :  { %s5161_s2 = smov [#allocation2]   ;;  %s46_s17 = sshll.u32 %s5435_s3, 4  ;;  %s47_s17 = int_to_ptr.hbm [resolvable:$true] %s46_s17 }
   0x9   :  { %s24_s14 = sshll.u32 %s5161_s2, 4  ;;  %s5162_s18 = smov 256   ;;  %s25_s14 = int_to_ptr.vmem [resolvable:$true] %s24_s14 }
   0xa   :  { %s5163_s4 = smov 16   ;;  %s5164_s19 = smov [#allocation6]  }
   0xb   :  { %30 = dma.hbm_to_vmem [thread:$0]  %s23_s13, 36864, %s25_s14, [#allocation3], %s5162_s18, %s5162_s18, %s5163_s4  }
   0xc   :  { %s48_s20 = sshll.u32 %s5164_s19, 4  ;;  %s5165_s21 = smov 128   ;;  %s49_s20 = int_to_ptr.vmem [resolvable:$true] %s48_s20 }
   0xd   :  { %s5166_s22 = smov 8   ;;  %s70_s24 = sshll.u32 %s5437_s5, 4  ;;  %s71_s24 = int_to_ptr.hbm [resolvable:$true] %s70_s24 }
   0xe   :  { %54 = dma.hbm_to_vmem [thread:$0]  %s47_s17, 8192, %s49_s20, [#allocation5], %s5165_s21, %s5165_s21, %s5166_s22  }
   0xf   :  { %s5167_s25 = smov [#allocation9]   ;;  %s84_s28 = sshll.u32 %s5438_s6, 4  ;;  %s85_s28 = int_to_ptr.hbm [resolvable:$true] %s84_s28 }
  0x10   :  { %s72_s26 = sshll.u32 %s5167_s25, 4  ;;  %s5168_s29 = smov 64   ;;  %s73_s26 = int_to_ptr.vmem [resolvable:$true] %s72_s26 }
  0x11   :  { %s5169_s30 = smov 4   ;;  %s5170_s8 = smov [#allocation10]  }
  0x12   :  { %78 = dma.hbm_to_vmem [thread:$0]  %s71_s24, 2048, %s73_s26, [#allocation8], %s5168_s29, %s5168_s29, %s5169_s30  }
  0x13   :  { %s86_s9 = sshll.u32 %s5170_s8, 4  ;;  %s87_s9 = int_to_ptr.vmem [resolvable:$true] %s86_s9 }
  0x14   :  { %89 = dma.hbm_to_vmem [thread:$0]  %s85_s28, 16, %s87_s9, [#allocation11]  }
  0x15   :  { %5151 = dma.done.wait [#allocation3], 36864  }
  0x16   :  { %5152 = vsyncadd [#allocation3], 4294930432 }
  0x17   :  { %5153 = dma.done.wait [#allocation5], 8256  }
  0x18   :  { %5154 = vsyncadd [#allocation5], 4294959040 }
  0x19   :  { %5155 = dma.done.wait [#allocation8], 2080  }
  0x1a   :  { %5156 = vsyncadd [#allocation8], 4294965216 }
  0x1b   :  { %5157 = dma.done.wait [#allocation11], 16  }
  0x1c   :  { %5158 = vsyncadd [#allocation11], 4294967280  ;;  %v3254_v0 = vld [vmem:[#allocation2 + $0xe0] sm:$0xf]  ;;  %v4651_v1 = vld [vmem:[#allocation2 + $0xec] sm:$0xf0] }
  0x1d   :  { %v3382_v2 = vld [vmem:[#allocation2 + $0x1e0] sm:$0xf]  ;;  %v3255_v3 = vor.u32 %v4651_v1, %v3254_v0  ;;  %v4683_v4 = vld [vmem:[#allocation2 + $0x1ec] sm:$0xf0] }
  0x1e   :  { %v3510_v5 = vld [vmem:[#allocation2 + $0x2e0] sm:$0xf]  ;;  %v4715_v6 = vld [vmem:[#allocation2 + $0x2ec] sm:$0xf0]  ;;  %v3383_v7 = vor.u32 %v4683_v4, %v3382_v2 }
  0x1f   :  { %v3511_v8 = vor.u32 %v4715_v6, %v3510_v5  ;;  %v3638_v9 = vld [vmem:[#allocation2 + $0x3e0] sm:$0xf]  ;;  %v4747_v10 = vld [vmem:[#allocation2 + $0x3ec] sm:$0xf0]  ;;  %1908 = vmatpush.bf16.msra.mxu0 %v3255_v3 }
  0x20   :  { %v3238_v11 = vld [vmem:[#allocation2 + $0xc0] sm:$0xf]  ;;  %v3639_v12 = vor.u32 %v4747_v10, %v3638_v9  ;;  %v4647_v13 = vld [vmem:[#allocation2 + $0xcc] sm:$0xf0]  ;;  %1922 = vmatpush.bf16.msra.mxu1 %v3383_v7 }
  0x21   :  { %v3366_v14 = vld [vmem:[#allocation2 + $0x1c0] sm:$0xf]  ;;  %v4679_v15 = vld [vmem:[#allocation2 + $0x1cc] sm:$0xf0]  ;;  %1936 = vmatpush.bf16.msra.mxu2 %v3511_v8  ;;  %v3239_v16 = vor.u32 %v4647_v13, %v3238_v11 }
  0x22   :  { %v3367_v17 = vor.u32 %v4679_v15, %v3366_v14  ;;  %v3494_v18 = vld [vmem:[#allocation2 + $0x2c0] sm:$0xf]  ;;  %v4711_v19 = vld [vmem:[#allocation2 + $0x2cc] sm:$0xf0]  ;;  %1950 = vmatpush.bf16.msra.mxu3 %v3639_v12 }
  0x23   :  { %v3622_v20 = vld [vmem:[#allocation2 + $0x3c0] sm:$0xf]  ;;  %v3495_v21 = vor.u32 %v4711_v19, %v3494_v18  ;;  %v4743_v22 = vld [vmem:[#allocation2 + $0x3cc] sm:$0xf0]  ;;  %1909 = vmatpush.bf16.msra.mxu0 %v3239_v16 }
  0x24   :  { %v3222_v23 = vld [vmem:[#allocation2 + $0xa0] sm:$0xf]  ;;  %v4643_v24 = vld [vmem:[#allocation2 + $0xac] sm:$0xf0]  ;;  %v3623_v25 = vor.u32 %v4743_v22, %v3622_v20  ;;  %1923 = vmatpush.bf16.msra.mxu1 %v3367_v17 }
  0x25   :  { %v3350_v26 = vld [vmem:[#allocation2 + $0x1a0] sm:$0xf]  ;;  %v4675_v27 = vld [vmem:[#allocation2 + $0x1ac] sm:$0xf0]  ;;  %v3223_v29 = vor.u32 %v4643_v24, %v3222_v23  ;;  %1937 = vmatpush.bf16.msra.mxu2 %v3495_v21 }
  0x26   :  { %v3478_v28 = vld [vmem:[#allocation2 + $0x2a0] sm:$0xf]  ;;  %v4707_v30 = vld [vmem:[#allocation2 + $0x2ac] sm:$0xf0]  ;;  %v3351_v33 = vor.u32 %v4675_v27, %v3350_v26  ;;  %1951 = vmatpush.bf16.msra.mxu3 %v3623_v25 }
  0x27   :  { %v3606_v31 = vld [vmem:[#allocation2 + $0x3a0] sm:$0xf]  ;;  %v4739_v32 = vld [vmem:[#allocation2 + $0x3ac] sm:$0xf0]  ;;  %v3479_v34 = vor.u32 %v4707_v30, %v3478_v28  ;;  %1910 = vmatpush.bf16.msra.mxu0 %v3223_v29 }
  0x28   :  { %v3206_v35 = vld [vmem:[#allocation2 + $0x80] sm:$0xf]  ;;  %v4639_v36 = vld [vmem:[#allocation2 + $0x8c] sm:$0xf0]  ;;  %v3607_v38 = vor.u32 %v4739_v32, %v3606_v31  ;;  %1924 = vmatpush.bf16.msra.mxu1 %v3351_v33 }
  0x29   :  { %v3334_v37 = vld [vmem:[#allocation2 + $0x180] sm:$0xf]  ;;  %v4671_v39 = vld [vmem:[#allocation2 + $0x18c] sm:$0xf0]  ;;  %v3207_v44 = vor.u32 %v4639_v36, %v3206_v35  ;;  %1938 = vmatpush.bf16.msra.mxu2 %v3479_v34 }
  0x2a   :  { %v3462_v40 = vld [vmem:[#allocation2 + $0x280] sm:$0xf]  ;;  %v4703_v41 = vld [vmem:[#allocation2 + $0x28c] sm:$0xf0]  ;;  %v3335_v45 = vor.u32 %v4671_v39, %v3334_v37  ;;  %1952 = vmatpush.bf16.msra.mxu3 %v3607_v38 }
  0x2b   :  { %v3590_v42 = vld [vmem:[#allocation2 + $0x380] sm:$0xf]  ;;  %v4735_v43 = vld [vmem:[#allocation2 + $0x38c] sm:$0xf0]  ;;  %v3463_v46 = vor.u32 %v4703_v41, %v3462_v40  ;;  %1911 = vmatpush.bf16.msra.mxu0 %v3207_v44 }
  0x2c   :  { %v3190_v47 = vld [vmem:[#allocation2 + $0x60] sm:$0xf]  ;;  %v4635_v48 = vld [vmem:[#allocation2 + $0x6c] sm:$0xf0]  ;;  %v3591_v50 = vor.u32 %v4735_v43, %v3590_v42  ;;  %1925 = vmatpush.bf16.msra.mxu1 %v3335_v45 }
  0x2d   :  { %v3318_v49 = vld [vmem:[#allocation2 + $0x160] sm:$0xf]  ;;  %v4667_v51 = vld [vmem:[#allocation2 + $0x16c] sm:$0xf0]  ;;  %v3191_v56 = vor.u32 %v4635_v48, %v3190_v47  ;;  %1939 = vmatpush.bf16.msra.mxu2 %v3463_v46 }
  0x2e   :  { %v3446_v52 = vld [vmem:[#allocation2 + $0x260] sm:$0xf]  ;;  %v4699_v53 = vld [vmem:[#allocation2 + $0x26c] sm:$0xf0]  ;;  %v3319_v57 = vor.u32 %v4667_v51, %v3318_v49  ;;  %1953 = vmatpush.bf16.msra.mxu3 %v3591_v50 }
  0x2f   :  { %v3574_v54 = vld [vmem:[#allocation2 + $0x360] sm:$0xf]  ;;  %v4731_v55 = vld [vmem:[#allocation2 + $0x36c] sm:$0xf0]  ;;  %v3447_v58 = vor.u32 %v4699_v53, %v3446_v52  ;;  %1912 = vmatpush.bf16.msra.mxu0 %v3191_v56  ;;  %v4616_v53 = vld [vmem:[%s5432_s0 + $0x20] sm:$0xf0] }
  0x30   :  { %v3174_v59 = vld [vmem:[#allocation2 + $0x40] sm:$0xf]  ;;  %v4631_v60 = vld [vmem:[#allocation2 + $0x4c] sm:$0xf0]  ;;  %v3575_v62 = vor.u32 %v4731_v55, %v3574_v54  ;;  %1926 = vmatpush.bf16.msra.mxu1 %v3319_v57  ;;  %v3114_v54 = vld [vmem:[%s5432_s0 + $0x8] sm:$0xf] }
  0x31   :  { %v3302_v61 = vld [vmem:[#allocation2 + $0x140] sm:$0xf]  ;;  %v4663_v63 = vld [vmem:[#allocation2 + $0x14c] sm:$0xf0]  ;;  %v3175_v4 = vor.u32 %v4631_v60, %v3174_v59  ;;  %1940 = vmatpush.bf16.msra.mxu2 %v3447_v58  ;;  %v4617_v59 = vld [vmem:[%s5432_s0 + $0x28] sm:$0xf0] }
  0x32   :  { %v3430_v0 = vld [vmem:[#allocation2 + $0x240] sm:$0xf]  ;;  %v4695_v1 = vld [vmem:[#allocation2 + $0x24c] sm:$0xf0]  ;;  %v3303_v5 = vor.u32 %v4663_v63, %v3302_v61  ;;  %1954 = vmatpush.bf16.msra.mxu3 %v3575_v62 }
  0x33   :  { %v3558_v2 = vld [vmem:[#allocation2 + $0x340] sm:$0xf]  ;;  %v4727_v3 = vld [vmem:[#allocation2 + $0x34c] sm:$0xf0]  ;;  %v3431_v6 = vor.u32 %v4695_v1, %v3430_v0  ;;  %1913 = vmatpush.bf16.msra.mxu0 %v3175_v4  ;;  %v5243_v1 = vor.u32 %v4617_v59, %v3114_v54 }
  0x34   :  { %v3158_v7 = vld [vmem:[#allocation2 + $0x20] sm:$0xf]  ;;  %v4627_v8 = vld [vmem:[#allocation2 + $0x2c] sm:$0xf0]  ;;  %v3559_v10 = vor.u32 %v4727_v3, %v3558_v2  ;;  %1927 = vmatpush.bf16.msra.mxu1 %v3303_v5 }
  0x35   :  { %v3286_v9 = vld [vmem:[#allocation2 + $0x120] sm:$0xf]  ;;  %v4659_v11 = vld [vmem:[#allocation2 + $0x12c] sm:$0xf0]  ;;  %v3159_v16 = vor.u32 %v4627_v8, %v3158_v7  ;;  %1941 = vmatpush.bf16.msra.mxu2 %v3431_v6  ;;  %v4612_v6 = vld [vmem:[%s5432_s0 + $0x4] sm:$0xf] }
  0x36   :  { %v3414_v12 = vld [vmem:[#allocation2 + $0x220] sm:$0xf]  ;;  %v4691_v13 = vld [vmem:[#allocation2 + $0x22c] sm:$0xf0]  ;;  %v3287_v19 = vor.u32 %v4659_v11, %v3286_v9  ;;  %1955 = vmatpush.bf16.msra.mxu3 %v3559_v10  ;;  %v3108_v7 = vld [vmem:[%s5432_s0 + $0x24] sm:$0xf0] }
  0x37   :  { %v3542_v14 = vld [vmem:[#allocation2 + $0x320] sm:$0xf]  ;;  %v4723_v15 = vld [vmem:[#allocation2 + $0x32c] sm:$0xf0]  ;;  %v3415_v20 = vor.u32 %v4691_v13, %v3414_v12  ;;  %1914 = vmatpush.bf16.msra.mxu0 %v3159_v16  ;;  %v4613_v8 = vld [vmem:[%s5432_s0 + $0xc] sm:$0xf]  ;;  %v5256_v10 = vor.u32 %v4612_v6, %v3108_v7 }
  0x38   :  { %v3142_v17 = vld [vmem:[#allocation2] sm:$0xf]  ;;  %v4623_v18 = vld [vmem:[#allocation2 + $0xc] sm:$0xf0]  ;;  %v3543_v24 = vor.u32 %v4723_v15, %v3542_v14  ;;  %1928 = vmatpush.bf16.msra.mxu1 %v3287_v19 }
  0x39   :  { %v3270_v21 = vld [vmem:[#allocation2 + $0x100] sm:$0xf]  ;;  %v4655_v22 = vld [vmem:[#allocation2 + $0x10c] sm:$0xf0]  ;;  %v3143_v31 = vor.u32 %v4623_v18, %v3142_v17  ;;  %1942 = vmatpush.bf16.msra.mxu2 %v3415_v20 }
  0x3a   :  { %v3398_v23 = vld [vmem:[#allocation2 + $0x200] sm:$0xf]  ;;  %v4687_v25 = vld [vmem:[#allocation2 + $0x20c] sm:$0xf0]  ;;  %v3271_v35 = vor.u32 %v4655_v22, %v3270_v21  ;;  %1956 = vmatpush.bf16.msra.mxu3 %v3543_v24 }
  0x3b   :  { %v3526_v26 = vld [vmem:[#allocation2 + $0x300] sm:$0xf]  ;;  %v4719_v27 = vld [vmem:[#allocation2 + $0x30c] sm:$0xf0]  ;;  %v3399_v36 = vor.u32 %v4687_v25, %v3398_v23  ;;  %1915 = vmatpush.bf16.msra.mxu0 %v3143_v31 }
  0x3c   :  { %v3766_v28 = vld [vmem:[#allocation2 + $0x4e0] sm:$0xf]  ;;  %v4779_v29 = vld [vmem:[#allocation2 + $0x4ec] sm:$0xf0]  ;;  %v3527_v39 = vor.u32 %v4719_v27, %v3526_v26  ;;  %1929 = vmatpush.bf16.msra.mxu1 %v3271_v35 }
  0x3d   :  { %v3894_v30 = vld [vmem:[#allocation2 + $0x5e0] sm:$0xf]  ;;  %v4811_v32 = vld [vmem:[#allocation2 + $0x5ec] sm:$0xf0]  ;;  %v3767_v40 = vor.u32 %v4779_v29, %v3766_v28  ;;  %1943 = vmatpush.bf16.msra.mxu2 %v3399_v36 }
  0x3e   :  { %v4022_v33 = vld [vmem:[#allocation2 + $0x6e0] sm:$0xf]  ;;  %v4843_v34 = vld [vmem:[#allocation2 + $0x6ec] sm:$0xf0]  ;;  %v3895_v43 = vor.u32 %v4811_v32, %v3894_v30  ;;  %1957 = vmatpush.bf16.msra.mxu3 %v3527_v39 }
  0x3f   :  { %v4150_v37 = vld [vmem:[#allocation2 + $0x7e0] sm:$0xf]  ;;  %v4875_v38 = vld [vmem:[#allocation2 + $0x7ec] sm:$0xf0]  ;;  %v4023_v44 = vor.u32 %v4843_v34, %v4022_v33  ;;  %1964 = vmatpush.bf16.msrb.mxu0 %v3767_v40  ;;  %1930 = vmatmul.bf16.vlgmr.msra.gmra.mxu1 %v5256_v10 }
  0x40   :  { %v3750_v41 = vld [vmem:[#allocation2 + $0x4c0] sm:$0xf]  ;;  %v4775_v42 = vld [vmem:[#allocation2 + $0x4cc] sm:$0xf0]  ;;  %v4151_v48 = vor.u32 %v4875_v38, %v4150_v37  ;;  %1978 = vmatpush.bf16.msrb.mxu1 %v3895_v43  ;;  %1944 = vmatmul.bf16.vlgmr.msra.gmra.mxu2 %v5243_v1 }
  0x41   :  { %v3878_v45 = vld [vmem:[#allocation2 + $0x5c0] sm:$0xf]  ;;  %v4807_v46 = vld [vmem:[#allocation2 + $0x5cc] sm:$0xf0]  ;;  %v3751_v55 = vor.u32 %v4775_v42, %v3750_v41  ;;  %1992 = vmatpush.bf16.msrb.mxu2 %v4023_v44 }
  0x42   :  { %v4006_v47 = vld [vmem:[#allocation2 + $0x6c0] sm:$0xf]  ;;  %v4839_v49 = vld [vmem:[#allocation2 + $0x6cc] sm:$0xf0]  ;;  %v3879_v60 = vor.u32 %v4807_v46, %v3878_v45  ;;  %2006 = vmatpush.bf16.msrb.mxu3 %v4151_v48 }
  0x43   :  { %v4134_v50 = vld [vmem:[#allocation2 + $0x7c0] sm:$0xf]  ;;  %v4871_v51 = vld [vmem:[#allocation2 + $0x7cc] sm:$0xf0]  ;;  %v4007_v61 = vor.u32 %v4839_v49, %v4006_v47  ;;  %1965 = vmatpush.bf16.msrb.mxu0 %v3751_v55 }
  0x44   :  { %v3106_v52 = vld [vmem:[%s5432_s0] sm:$0xf]  ;;  %v4771_v57 = vld [vmem:[#allocation2 + $0x4ac] sm:$0xf0]  ;;  %v4135_v2 = vor.u32 %v4871_v51, %v4134_v50  ;;  %1979 = vmatpush.bf16.msrb.mxu1 %v3879_v60 }
  0x45   :  { %v3734_v56 = vld [vmem:[#allocation2 + $0x4a0] sm:$0xf]  ;;  %v5238_v58 = vor.u32 %v4616_v53, %v3106_v52  ;;  %v4803_v63 = vld [vmem:[#allocation2 + $0x5ac] sm:$0xf0]  ;;  %1993 = vmatpush.bf16.msrb.mxu2 %v4007_v61 }
  0x46   :  { %v3862_v62 = vld [vmem:[#allocation2 + $0x5a0] sm:$0xf]  ;;  %v4835_v3 = vld [vmem:[#allocation2 + $0x6ac] sm:$0xf0]  ;;  %v3735_v9 = vor.u32 %v4771_v57, %v3734_v56  ;;  %2007 = vmatpush.bf16.msrb.mxu3 %v4135_v2 }
  0x47   :  { %v3990_v0 = vld [vmem:[#allocation2 + $0x6a0] sm:$0xf]  ;;  %v4867_v5 = vld [vmem:[#allocation2 + $0x7ac] sm:$0xf0]  ;;  %1916 = vmatmul.bf16.vlgmr.msra.gmra.mxu0 %v5238_v58  ;;  %v3863_v12 = vor.u32 %v4803_v63, %v3862_v62 }
  0x48   :  { %v4118_v4 = vld [vmem:[#allocation2 + $0x7a0] sm:$0xf]  ;;  %v3116_v11 = vld [vmem:[%s5432_s0 + $0x2c] sm:$0xf0]  ;;  %v3991_v13 = vor.u32 %v4835_v3, %v3990_v0  ;;  %1966 = vmatpush.bf16.msrb.mxu0 %v3735_v9 }
  0x49   :  { %v3718_v14 = vld [vmem:[#allocation2 + $0x480] sm:$0xf]  ;;  %v4767_v15 = vld [vmem:[#allocation2 + $0x48c] sm:$0xf0]  ;;  %v5261_v17 = vor.u32 %v4613_v8, %v3116_v11  ;;  %v4119_v18 = vor.u32 %v4867_v5, %v4118_v4  ;;  %1980 = vmatpush.bf16.msrb.mxu1 %v3863_v12 }
  0x4a   :  { %v3846_v16 = vld [vmem:[#allocation2 + $0x580] sm:$0xf]  ;;  %v4799_v19 = vld [vmem:[#allocation2 + $0x58c] sm:$0xf0]  ;;  %v3719_v24 = vor.u32 %v4767_v15, %v3718_v14  ;;  %1994 = vmatpush.bf16.msrb.mxu2 %v3991_v13  ;;  %v4649_v13 = vld [vmem:[#allocation2 + $0xe4] sm:$0xf] }
  0x4b   :  { %v3974_v20 = vld [vmem:[#allocation2 + $0x680] sm:$0xf]  ;;  %v4831_v21 = vld [vmem:[#allocation2 + $0x68c] sm:$0xf0]  ;;  %1958 = vmatmul.bf16.vlgmr.msra.gmra.mxu3 %v5261_v17  ;;  %v3847_v25 = vor.u32 %v4799_v19, %v3846_v16  ;;  %v3256_v14 = vld [vmem:[#allocation2 + $0xf0] sm:$0xf0] }
  0x4c   :  { %v4102_v22 = vld [vmem:[#allocation2 + $0x780] sm:$0xf]  ;;  %v4863_v23 = vld [vmem:[#allocation2 + $0x78c] sm:$0xf0]  ;;  %v3975_v26 = vor.u32 %v4831_v21, %v3974_v20  ;;  %2008 = vmatpush.bf16.msrb.mxu3 %v4119_v18  ;;  %1967 = vmatpush.bf16.msrb.mxu0 %v3719_v24  ;;  %v4681_v15 = vld [vmem:[#allocation2 + $0x1e4] sm:$0xf] }
  0x4d   :  { %v3702_v27 = vld [vmem:[#allocation2 + $0x460] sm:$0xf]  ;;  %v4763_v28 = vld [vmem:[#allocation2 + $0x46c] sm:$0xf0]  ;;  %v4103_v30 = vor.u32 %v4863_v23, %v4102_v22  ;;  %1981 = vmatpush.bf16.msrb.mxu1 %v3847_v25  ;;  %v3384_v16 = vld [vmem:[#allocation2 + $0x1f0] sm:$0xf0] }
  0x4e   :  { %v3830_v29 = vld [vmem:[#allocation2 + $0x560] sm:$0xf]  ;;  %v4795_v31 = vld [vmem:[#allocation2 + $0x56c] sm:$0xf0]  ;;  %v3703_v36 = vor.u32 %v4763_v28, %v3702_v27  ;;  %1995 = vmatpush.bf16.msrb.mxu2 %v3975_v26  ;;  %v4713_v18 = vld [vmem:[#allocation2 + $0x2e4] sm:$0xf] }
  0x4f   :  { %v3958_v32 = vld [vmem:[#allocation2 + $0x660] sm:$0xf]  ;;  %v4827_v33 = vld [vmem:[#allocation2 + $0x66c] sm:$0xf0]  ;;  %v3831_v37 = vor.u32 %v4795_v31, %v3830_v29  ;;  %v3512_v20 = vld [vmem:[#allocation2 + $0x2f0] sm:$0xf0] }
  0x50   :  { %v4086_v34 = vld [vmem:[#allocation2 + $0x760] sm:$0xf]  ;;  %v4859_v35 = vld [vmem:[#allocation2 + $0x76c] sm:$0xf0]  ;;  %v3959_v38 = vor.u32 %v4827_v33, %v3958_v32  ;;  %2009 = vmatpush.bf16.msrb.mxu3 %v4103_v30  ;;  %1968 = vmatpush.bf16.msrb.mxu0 %v3703_v36  ;;  %v4618_v22 = vld [vmem:[%s5432_s0 + $0x30] sm:$0xf0]  ;;  %v3259_v33 = vor.u32 %v4649_v13, %v3256_v14 }
  0x51   :  { %v3686_v39 = vld [vmem:[#allocation2 + $0x440] sm:$0xf]  ;;  %v4759_v40 = vld [vmem:[#allocation2 + $0x44c] sm:$0xf0]  ;;  %v4087_v42 = vor.u32 %v4859_v35, %v4086_v34  ;;  %1982 = vmatpush.bf16.msrb.mxu1 %v3831_v37  ;;  %v3130_v25 = vld [vmem:[%s5432_s0 + $0x18] sm:$0xf]  ;;  %v3387_v34 = vor.u32 %v4681_v15, %v3384_v16 }
  0x52   :  { %v3814_v41 = vld [vmem:[#allocation2 + $0x540] sm:$0xf]  ;;  %v4791_v43 = vld [vmem:[#allocation2 + $0x54c] sm:$0xf0]  ;;  %v3687_v48 = vor.u32 %v4759_v40, %v3686_v39  ;;  %1996 = vmatpush.bf16.msrb.mxu2 %v3959_v38  ;;  %v4619_v26 = vld [vmem:[%s5432_s0 + $0x38] sm:$0xf0]  ;;  %v3515_v38 = vor.u32 %v4713_v18, %v3512_v20 }
  0x53   :  { %v3942_v44 = vld [vmem:[#allocation2 + $0x640] sm:$0xf]  ;;  %v4823_v45 = vld [vmem:[#allocation2 + $0x64c] sm:$0xf0]  ;;  %v3815_v50 = vor.u32 %v4791_v43, %v3814_v41  ;;  %v4614_v27 = vld [vmem:[%s5432_s0 + $0x14] sm:$0xf]  ;;  %v5291_v43 = vor.u32 %v4619_v26, %v3130_v25 }
  0x54   :  { %v4070_v46 = vld [vmem:[#allocation2 + $0x740] sm:$0xf]  ;;  %v4855_v47 = vld [vmem:[#allocation2 + $0x74c] sm:$0xf0]  ;;  %v3943_v51 = vor.u32 %v4823_v45, %v3942_v44  ;;  %2010 = vmatpush.bf16.msrb.mxu3 %v4087_v42  ;;  %1969 = vmatpush.bf16.msrb.mxu0 %v3687_v48  ;;  %v3124_v30 = vld [vmem:[%s5432_s0 + $0x34] sm:$0xf0] }
  0x55   :  { %v3670_v49 = vld [vmem:[#allocation2 + $0x420] sm:$0xf]  ;;  %v4755_v52 = vld [vmem:[#allocation2 + $0x42c] sm:$0xf0]  ;;  %v4071_v55 = vor.u32 %v4855_v47, %v4070_v46  ;;  %1983 = vmatpush.bf16.msrb.mxu1 %v3815_v50  ;;  %v4615_v31 = vld [vmem:[%s5432_s0 + $0x1c] sm:$0xf]  ;;  %v5293_v44 = vor.u32 %v4614_v27, %v3124_v30 }
  0x56   :  { %v3798_v53 = vld [vmem:[#allocation2 + $0x520] sm:$0xf]  ;;  %v4787_v54 = vld [vmem:[#allocation2 + $0x52c] sm:$0xf0]  ;;  %v3671_v63 = vor.u32 %v4755_v52, %v3670_v49  ;;  %1997 = vmatpush.bf16.msrb.mxu2 %v3943_v51  ;;  %v4645_v37 = vld [vmem:[#allocation2 + $0xc4] sm:$0xf] }
  0x57   :  { %v3926_v56 = vld [vmem:[#allocation2 + $0x620] sm:$0xf]  ;;  %v4819_v57 = vld [vmem:[#allocation2 + $0x62c] sm:$0xf0]  ;;  %v3799_v5 = vor.u32 %v4787_v54, %v3798_v53  ;;  %v3240_v40 = vld [vmem:[#allocation2 + $0xd0] sm:$0xf0] }
  0x58   :  { %v4054_v59 = vld [vmem:[#allocation2 + $0x720] sm:$0xf]  ;;  %v4851_v60 = vld [vmem:[#allocation2 + $0x72c] sm:$0xf0]  ;;  %v3927_v6 = vor.u32 %v4819_v57, %v3926_v56  ;;  %2011 = vmatpush.bf16.msrb.mxu3 %v4071_v55  ;;  %1970 = vmatpush.bf16.msrb.mxu0 %v3671_v63  ;;  %v4677_v41 = vld [vmem:[#allocation2 + $0x1c4] sm:$0xf]  ;;  %v3243_v49 = vor.u32 %v4645_v37, %v3240_v40 }
  0x59   :  { %v3654_v61 = vld [vmem:[#allocation2 + $0x400] sm:$0xf]  ;;  %v4751_v62 = vld [vmem:[#allocation2 + $0x40c] sm:$0xf0]  ;;  %v4055_v11 = vor.u32 %v4851_v60, %v4054_v59  ;;  %1984 = vmatpush.bf16.msrb.mxu1 %v3799_v5  ;;  %v3368_v42 = vld [vmem:[#allocation2 + $0x1d0] sm:$0xf0] }
  0x5a   :  { %v3782_v0 = vld [vmem:[#allocation2 + $0x500] sm:$0xf]  ;;  %v4783_v2 = vld [vmem:[#allocation2 + $0x50c] sm:$0xf0]  ;;  %v3655_v19 = vor.u32 %v4751_v62, %v3654_v61  ;;  %1998 = vmatpush.bf16.msrb.mxu2 %v3927_v6  ;;  %v4709_v45 = vld [vmem:[#allocation2 + $0x2c4] sm:$0xf]  ;;  %v3371_v50 = vor.u32 %v4677_v41, %v3368_v42 }
  0x5b   :  { %v3910_v3 = vld [vmem:[#allocation2 + $0x600] sm:$0xf]  ;;  %v4815_v4 = vld [vmem:[#allocation2 + $0x60c] sm:$0xf0]  ;;  %v3783_v23 = vor.u32 %v4783_v2, %v3782_v0  ;;  %v3496_v46 = vld [vmem:[#allocation2 + $0x2d0] sm:$0xf0] }
  0x5c   :  { %v4038_v7 = vld [vmem:[#allocation2 + $0x700] sm:$0xf]  ;;  %v4847_v8 = vld [vmem:[#allocation2 + $0x70c] sm:$0xf0]  ;;  %v3911_v24 = vor.u32 %v4815_v4, %v3910_v3  ;;  %2012 = vmatpush.bf16.msrb.mxu3 %v4055_v11  ;;  %1971 = vmatpush.bf16.msrb.mxu0 %v3655_v19  ;;  %v4641_v53 = vld [vmem:[#allocation2 + $0xa4] sm:$0xf]  ;;  %v3499_v54 = vor.u32 %v4709_v45, %v3496_v46 }
  0x5d   :  { %v4278_v9 = vld [vmem:[#allocation2 + $0x8e0] sm:$0xf]  ;;  %v4907_v12 = vld [vmem:[#allocation2 + $0x8ec] sm:$0xf0]  ;;  %v4039_v28 = vor.u32 %v4847_v8, %v4038_v7  ;;  %1985 = vmatpush.bf16.msrb.mxu1 %v3783_v23  ;;  %v3224_v55 = vld [vmem:[#allocation2 + $0xb0] sm:$0xf0] }
  0x5e   :  { %v3122_v21 = vld [vmem:[%s5432_s0 + $0x10] sm:$0xf]  ;;  %v4279_v29 = vor.u32 %v4907_v12, %v4278_v9  ;;  %v3132_v32 = vld [vmem:[%s5432_s0 + $0x3c] sm:$0xf0]  ;;  %1999 = vmatpush.bf16.msrb.mxu2 %v3911_v24  ;;  %v4673_v56 = vld [vmem:[#allocation2 + $0x1a4] sm:$0xf]  ;;  %v3227_v62 = vor.u32 %v4641_v53, %v3224_v55 }
  0x5f   :  { %v4262_v35 = vld [vmem:[#allocation2 + $0x8c0] sm:$0xf]  ;;  %v4903_v36 = vld [vmem:[#allocation2 + $0x8cc] sm:$0xf0]  ;;  %v5289_v39 = vor.u32 %v4618_v22, %v3122_v21  ;;  %v5295_v47 = vor.u32 %v4615_v31, %v3132_v32  ;;  %v3352_v57 = vld [vmem:[#allocation2 + $0x1b0] sm:$0xf0] }
  0x60   :  { %2013 = vmatpush.bf16.msrb.mxu3 %v4039_v28  ;;  %2020 = vmatpush.bf16.msra.mxu0 %v4279_v29  ;;  %v4263_v48 = vor.u32 %v4903_v36, %v4262_v35  ;;  %v4246_v51 = vld [vmem:[#allocation2 + $0x8a0] sm:$0xf]  ;;  %v4899_v52 = vld [vmem:[#allocation2 + $0x8ac] sm:$0xf0]  ;;  %v4705_v59 = vld [vmem:[#allocation2 + $0x2a4] sm:$0xf]  ;;  %v3355_v63 = vor.u32 %v4673_v56, %v3352_v57 }
  0x61   :  { %2034 = vmatpush.bf16.msra.mxu1 %v3259_v33  ;;  %1972 = vmatmul.bf16.vlgmr.msrb.gmra.mxu0 %v5289_v39  ;;  %v3480_v60 = vld [vmem:[#allocation2 + $0x2b0] sm:$0xf0]  ;;  %v4247_v61 = vor.u32 %v4899_v52, %v4246_v51  ;;  %v4230_v0 = vld [vmem:[#allocation2 + $0x880] sm:$0xf]  ;;  %v4895_v2 = vld [vmem:[#allocation2 + $0x88c] sm:$0xf0] }
  0x62   :  { %2048 = vmatpush.bf16.msra.mxu2 %v3387_v34  ;;  %1986 = vmatmul.bf16.vlgmr.msrb.gmra.mxu1 %v5293_v44  ;;  %v4637_v3 = vld [vmem:[#allocation2 + $0x84] sm:$0xf]  ;;  %v3483_v4 = vor.u32 %v4705_v59, %v3480_v60  ;;  %v3208_v5 = vld [vmem:[#allocation2 + $0x90] sm:$0xf0]  ;;  %v4231_v11 = vor.u32 %v4895_v2, %v4230_v0  ;;  %v4214_v14 = vld [vmem:[#allocation2 + $0x860] sm:$0xf] }
  0x63   :  { %2000 = vmatmul.bf16.vlgmr.msrb.gmra.mxu2 %v5291_v43  ;;  %2014 = vmatmul.bf16.vlgmr.msrb.gmra.mxu3 %v5295_v47  ;;  %v4669_v6 = vld [vmem:[#allocation2 + $0x184] sm:$0xf]  ;;  %v3336_v7 = vld [vmem:[#allocation2 + $0x190] sm:$0xf0]  ;;  %v3211_v12 = vor.u32 %v4637_v3, %v3208_v5  ;;  %v4891_v15 = vld [vmem:[#allocation2 + $0x86c] sm:$0xf0] }
  0x64   :  { %2062 = vmatpush.bf16.msra.mxu3 %v3515_v38  ;;  %2021 = vmatpush.bf16.msra.mxu0 %v4263_v48  ;;  %v4701_v8 = vld [vmem:[#allocation2 + $0x284] sm:$0xf]  ;;  %v3464_v9 = vld [vmem:[#allocation2 + $0x290] sm:$0xf0]  ;;  %v3339_v13 = vor.u32 %v4669_v6, %v3336_v7  ;;  %v4215_v24 = vor.u32 %v4891_v15, %v4214_v14  ;;  %v4198_v27 = vld [vmem:[#allocation2 + $0x840] sm:$0xf] }
  0x65   :  { %2035 = vmatpush.bf16.msra.mxu1 %v3243_v49  ;;  %v4633_v16 = vld [vmem:[#allocation2 + $0x64] sm:$0xf]  ;;  %v3467_v18 = vor.u32 %v4701_v8, %v3464_v9  ;;  %v3192_v19 = vld [vmem:[#allocation2 + $0x70] sm:$0xf0]  ;;  %v4887_v28 = vld [vmem:[#allocation2 + $0x84c] sm:$0xf0] }
  0x66   :  { %2049 = vmatpush.bf16.msra.mxu2 %v3371_v50  ;;  %v4665_v20 = vld [vmem:[#allocation2 + $0x164] sm:$0xf]  ;;  %v3320_v21 = vld [vmem:[#allocation2 + $0x170] sm:$0xf0]  ;;  %v3195_v25 = vor.u32 %v4633_v16, %v3192_v19  ;;  %v4199_v36 = vor.u32 %v4887_v28, %v4198_v27  ;;  %v4182_v40 = vld [vmem:[#allocation2 + $0x820] sm:$0xf] }
  0x67   :  { %v4697_v22 = vld [vmem:[#allocation2 + $0x264] sm:$0xf]  ;;  %v3448_v23 = vld [vmem:[#allocation2 + $0x270] sm:$0xf0]  ;;  %v3323_v26 = vor.u32 %v4665_v20, %v3320_v21  ;;  %v4883_v41 = vld [vmem:[#allocation2 + $0x82c] sm:$0xf0] }
  0x68   :  { %2063 = vmatpush.bf16.msra.mxu3 %v3499_v54  ;;  %2022 = vmatpush.bf16.msra.mxu0 %v4247_v61  ;;  %v4629_v29 = vld [vmem:[#allocation2 + $0x44] sm:$0xf]  ;;  %v3451_v30 = vor.u32 %v4697_v22, %v3448_v23  ;;  %v3176_v31 = vld [vmem:[#allocation2 + $0x50] sm:$0xf0]  ;;  %v4183_v52 = vor.u32 %v4883_v41, %v4182_v40  ;;  %v4166_v53 = vld [vmem:[#allocation2 + $0x800] sm:$0xf] }
  0x69   :  { %2036 = vmatpush.bf16.msra.mxu1 %v3227_v62  ;;  %v4661_v32 = vld [vmem:[#allocation2 + $0x144] sm:$0xf]  ;;  %v3304_v33 = vld [vmem:[#allocation2 + $0x150] sm:$0xf0]  ;;  %v3179_v37 = vor.u32 %v4629_v29, %v3176_v31  ;;  %v4879_v54 = vld [vmem:[#allocation2 + $0x80c] sm:$0xf0] }
  0x6a   :  { %2050 = vmatpush.bf16.msra.mxu2 %v3355_v63  ;;  %v4693_v34 = vld [vmem:[#allocation2 + $0x244] sm:$0xf]  ;;  %v3432_v35 = vld [vmem:[#allocation2 + $0x250] sm:$0xf0]  ;;  %v3307_v38 = vor.u32 %v4661_v32, %v3304_v33  ;;  %v4167_v6 = vor.u32 %v4879_v54, %v4166_v53  ;;  %v3138_v14 = vld [vmem:[%s5432_s0 + $0x20] sm:$0xf] }
  0x6b   :  { %v4625_v42 = vld [vmem:[#allocation2 + $0x24] sm:$0xf]  ;;  %v3435_v45 = vor.u32 %v4693_v34, %v3432_v35  ;;  %v3160_v46 = vld [vmem:[#allocation2 + $0x30] sm:$0xf0] }
  0x6c   :  { %2064 = vmatpush.bf16.msra.mxu3 %v3483_v4  ;;  %2023 = vmatpush.bf16.msra.mxu0 %v4231_v11  ;;  %v4657_v48 = vld [vmem:[#allocation2 + $0x124] sm:$0xf]  ;;  %v3288_v49 = vld [vmem:[#allocation2 + $0x130] sm:$0xf0]  ;;  %v3163_v56 = vor.u32 %v4625_v42, %v3160_v46 }
  0x6d   :  { %2037 = vmatpush.bf16.msra.mxu1 %v3211_v12  ;;  %v4689_v50 = vld [vmem:[#allocation2 + $0x224] sm:$0xf]  ;;  %v3416_v51 = vld [vmem:[#allocation2 + $0x230] sm:$0xf0]  ;;  %v3291_v57 = vor.u32 %v4657_v48, %v3288_v49 }
  0x6e   :  { %2051 = vmatpush.bf16.msra.mxu2 %v3339_v13  ;;  %v4621_v55 = vld [vmem:[#allocation2 + $0x4] sm:$0xf]  ;;  %v3144_v59 = vld [vmem:[#allocation2 + $0x10] sm:$0xf0]  ;;  %v3419_v62 = vor.u32 %v4689_v50, %v3416_v51 }
  0x6f   :  { %v4653_v60 = vld [vmem:[#allocation2 + $0x104] sm:$0xf]  ;;  %v3272_v61 = vld [vmem:[#allocation2 + $0x110] sm:$0xf0]  ;;  %v3147_v11 = vor.u32 %v4621_v55, %v3144_v59 }
  0x70   :  { %2065 = vmatpush.bf16.msra.mxu3 %v3467_v18  ;;  %2024 = vmatpush.bf16.msra.mxu0 %v4215_v24  ;;  %v4685_v63 = vld [vmem:[#allocation2 + $0x204] sm:$0xf]  ;;  %v3400_v0 = vld [vmem:[#allocation2 + $0x210] sm:$0xf0]  ;;  %v3275_v12 = vor.u32 %v4653_v60, %v3272_v61 }
  0x71   :  { %2038 = vmatpush.bf16.msra.mxu1 %v3195_v25  ;;  %v4745_v2 = vld [vmem:[#allocation2 + $0x3e4] sm:$0xf]  ;;  %v3640_v3 = vld [vmem:[#allocation2 + $0x3f0] sm:$0xf0]  ;;  %v3403_v16 = vor.u32 %v4685_v63, %v3400_v0 }
  0x72   :  { %2052 = vmatpush.bf16.msra.mxu2 %v3323_v26  ;;  %v4777_v4 = vld [vmem:[#allocation2 + $0x4e4] sm:$0xf]  ;;  %v3768_v5 = vld [vmem:[#allocation2 + $0x4f0] sm:$0xf0]  ;;  %v3643_v18 = vor.u32 %v4745_v2, %v3640_v3 }
  0x73   :  { %v4809_v7 = vld [vmem:[#allocation2 + $0x5e4] sm:$0xf]  ;;  %v3896_v8 = vld [vmem:[#allocation2 + $0x5f0] sm:$0xf0]  ;;  %v3771_v19 = vor.u32 %v4777_v4, %v3768_v5 }
  0x74   :  { %2066 = vmatpush.bf16.msra.mxu3 %v3451_v30  ;;  %2025 = vmatpush.bf16.msra.mxu0 %v4199_v36  ;;  %v4841_v9 = vld [vmem:[#allocation2 + $0x6e4] sm:$0xf]  ;;  %v4024_v13 = vld [vmem:[#allocation2 + $0x6f0] sm:$0xf0]  ;;  %v3899_v20 = vor.u32 %v4809_v7, %v3896_v8 }
  0x75   :  { %2039 = vmatpush.bf16.msra.mxu1 %v3179_v37  ;;  %v4620_v15 = vld [vmem:[%s5432_s0 + $0x40] sm:$0xf0]  ;;  %v3624_v22 = vld [vmem:[#allocation2 + $0x3d0] sm:$0xf0]  ;;  %v4027_v24 = vor.u32 %v4841_v9, %v4024_v13 }
  0x76   :  { %2053 = vmatpush.bf16.msra.mxu2 %v3307_v38  ;;  %v4741_v21 = vld [vmem:[#allocation2 + $0x3c4] sm:$0xf]  ;;  %v5307_v25 = vor.u32 %v4620_v15, %v3138_v14  ;;  %v3752_v26 = vld [vmem:[#allocation2 + $0x4d0] sm:$0xf0] }
  0x77   :  { %v4773_v23 = vld [vmem:[#allocation2 + $0x4c4] sm:$0xf]  ;;  %v3880_v28 = vld [vmem:[#allocation2 + $0x5d0] sm:$0xf0]  ;;  %v3627_v31 = vor.u32 %v4741_v21, %v3624_v22 }
  0x78   :  { %2067 = vmatpush.bf16.msra.mxu3 %v3435_v45  ;;  %2026 = vmatpush.bf16.msra.mxu0 %v4183_v52  ;;  %v4805_v27 = vld [vmem:[#allocation2 + $0x5c4] sm:$0xf]  ;;  %v4008_v30 = vld [vmem:[#allocation2 + $0x6d0] sm:$0xf0]  ;;  %v3755_v32 = vor.u32 %v4773_v23, %v3752_v26 }
  0x79   :  { %2040 = vmatpush.bf16.msra.mxu1 %v3163_v56  ;;  %v4837_v29 = vld [vmem:[#allocation2 + $0x6c4] sm:$0xf]  ;;  %v3883_v33 = vor.u32 %v4805_v27, %v3880_v28  ;;  %v3608_v35 = vld [vmem:[#allocation2 + $0x3b0] sm:$0xf0] }
  0x7a   :  { %2054 = vmatpush.bf16.msra.mxu2 %v3291_v57  ;;  %v4737_v34 = vld [vmem:[#allocation2 + $0x3a4] sm:$0xf]  ;;  %v4011_v37 = vor.u32 %v4837_v29, %v4008_v30  ;;  %v3736_v38 = vld [vmem:[#allocation2 + $0x4b0] sm:$0xf0] }
  0x7b   :  { %v4769_v36 = vld [vmem:[#allocation2 + $0x4a4] sm:$0xf]  ;;  %v3864_v41 = vld [vmem:[#allocation2 + $0x5b0] sm:$0xf0]  ;;  %v3611_v46 = vor.u32 %v4737_v34, %v3608_v35 }
  0x7c   :  { %2068 = vmatpush.bf16.msra.mxu3 %v3419_v62  ;;  %2027 = vmatpush.bf16.msra.mxu0 %v4167_v6  ;;  %v4801_v40 = vld [vmem:[#allocation2 + $0x5a4] sm:$0xf]  ;;  %v3992_v45 = vld [vmem:[#allocation2 + $0x6b0] sm:$0xf0]  ;;  %v3739_v48 = vor.u32 %v4769_v36, %v3736_v38 }
  0x7d   :  { %2041 = vmatpush.bf16.msra.mxu1 %v3147_v11  ;;  %v4833_v42 = vld [vmem:[#allocation2 + $0x6a4] sm:$0xf]  ;;  %v3867_v49 = vor.u32 %v4801_v40, %v3864_v41  ;;  %v3592_v51 = vld [vmem:[#allocation2 + $0x390] sm:$0xf0] }
  0x7e   :  { %2055 = vmatpush.bf16.msra.mxu2 %v3275_v12  ;;  %v4733_v50 = vld [vmem:[#allocation2 + $0x384] sm:$0xf]  ;;  %v3995_v53 = vor.u32 %v4833_v42, %v3992_v45  ;;  %v3720_v54 = vld [vmem:[#allocation2 + $0x490] sm:$0xf0] }
  0x7f   :  { %2028 = vmatmul.bf16.vlgmr.msra.gmra.mxu0 %v5307_v25  ;;  %v4765_v52 = vld [vmem:[#allocation2 + $0x484] sm:$0xf]  ;;  %v3848_v56 = vld [vmem:[#allocation2 + $0x590] sm:$0xf0]  ;;  %v3595_v60 = vor.u32 %v4733_v50, %v3592_v51 }
  0x80   :  { %2069 = vmatpush.bf16.msra.mxu3 %v3403_v16  ;;  %2076 = vmatpush.bf16.msrb.mxu0 %v3643_v18  ;;  %v4797_v55 = vld [vmem:[#allocation2 + $0x584] sm:$0xf]  ;;  %v3976_v59 = vld [vmem:[#allocation2 + $0x690] sm:$0xf0]  ;;  %v3723_v61 = vor.u32 %v4765_v52, %v3720_v54 }
  0x81   :  { %2090 = vmatpush.bf16.msrb.mxu1 %v3771_v19  ;;  %2056 = vmatmul.bf16.vlgmr.msra.gmra.mxu2 %v5256_v10  ;;  %v4829_v57 = vld [vmem:[#allocation2 + $0x684] sm:$0xf]  ;;  %v3851_v62 = vor.u32 %v4797_v55, %v3848_v56  ;;  %v3576_v0 = vld [vmem:[#allocation2 + $0x370] sm:$0xf0] }
  0x82   :  { %2104 = vmatpush.bf16.msrb.mxu2 %v3899_v20  ;;  %2042 = vmatmul.bf16.vlgmr.msra.gmra.mxu1 %v5238_v58  ;;  %v4729_v63 = vld [vmem:[#allocation2 + $0x364] sm:$0xf]  ;;  %v3979_v3 = vor.u32 %v4829_v57, %v3976_v59  ;;  %v3704_v4 = vld [vmem:[#allocation2 + $0x470] sm:$0xf0]  ;;  %v3262_v57 = vld [vmem:[#allocation2 + $0xe8] sm:$0xf] }
  0x83   :  { %2070 = vmatmul.bf16.vlgmr.msra.gmra.mxu3 %v5243_v1  ;;  %v4761_v2 = vld [vmem:[#allocation2 + $0x464] sm:$0xf]  ;;  %v3832_v6 = vld [vmem:[#allocation2 + $0x570] sm:$0xf0]  ;;  %v3579_v9 = vor.u32 %v4729_v63, %v3576_v0  ;;  %v4652_v59 = vld [vmem:[#allocation2 + $0xf4] sm:$0xf0] }
  0x84   :  { %2118 = vmatpush.bf16.msrb.mxu3 %v4027_v24  ;;  %2077 = vmatpush.bf16.msrb.mxu0 %v3627_v31  ;;  %v4793_v5 = vld [vmem:[#allocation2 + $0x564] sm:$0xf]  ;;  %v3960_v8 = vld [vmem:[#allocation2 + $0x670] sm:$0xf0]  ;;  %v3707_v11 = vor.u32 %v4761_v2, %v3704_v4  ;;  %v4684_v63 = vld [vmem:[#allocation2 + $0x1f4] sm:$0xf0]  ;;  %v3263_v4 = vor.u32 %v4652_v59, %v3262_v57 }
  0x85   :  { %2091 = vmatpush.bf16.msrb.mxu1 %v3755_v32  ;;  %v4825_v7 = vld [vmem:[#allocation2 + $0x664] sm:$0xf]  ;;  %v3835_v12 = vor.u32 %v4793_v5, %v3832_v6  ;;  %v3560_v14 = vld [vmem:[#allocation2 + $0x350] sm:$0xf0] }
  0x86   :  { %2105 = vmatpush.bf16.msrb.mxu2 %v3883_v33  ;;  %v4725_v13 = vld [vmem:[#allocation2 + $0x344] sm:$0xf]  ;;  %v3963_v16 = vor.u32 %v4825_v7, %v3960_v8  ;;  %v3688_v18 = vld [vmem:[#allocation2 + $0x450] sm:$0xf0] }
  0x87   :  { %v4757_v15 = vld [vmem:[#allocation2 + $0x444] sm:$0xf]  ;;  %v3816_v20 = vld [vmem:[#allocation2 + $0x550] sm:$0xf0]  ;;  %v3563_v23 = vor.u32 %v4725_v13, %v3560_v14  ;;  %v3374_v13 = vld [vmem:[#allocation2 + $0x1c8] sm:$0xf] }
  0x88   :  { %2119 = vmatpush.bf16.msrb.mxu3 %v4011_v37  ;;  %2078 = vmatpush.bf16.msrb.mxu0 %v3611_v46  ;;  %v4789_v19 = vld [vmem:[#allocation2 + $0x544] sm:$0xf]  ;;  %v3944_v22 = vld [vmem:[#allocation2 + $0x650] sm:$0xf0]  ;;  %v3691_v24 = vor.u32 %v4757_v15, %v3688_v18  ;;  %v4680_v14 = vld [vmem:[#allocation2 + $0x1d4] sm:$0xf0] }
  0x89   :  { %2092 = vmatpush.bf16.msrb.mxu1 %v3739_v48  ;;  %v4821_v21 = vld [vmem:[#allocation2 + $0x644] sm:$0xf]  ;;  %v3819_v26 = vor.u32 %v4789_v19, %v3816_v20  ;;  %v3544_v28 = vld [vmem:[#allocation2 + $0x330] sm:$0xf0] }
  0x8a   :  { %2106 = vmatpush.bf16.msrb.mxu2 %v3867_v49  ;;  %v4721_v27 = vld [vmem:[#allocation2 + $0x324] sm:$0xf]  ;;  %v3947_v30 = vor.u32 %v4821_v21, %v3944_v22  ;;  %v3672_v31 = vld [vmem:[#allocation2 + $0x430] sm:$0xf0]  ;;  %v3375_v22 = vor.u32 %v4680_v14, %v3374_v13 }
  0x8b   :  { %v4753_v29 = vld [vmem:[#allocation2 + $0x424] sm:$0xf]  ;;  %v3800_v33 = vld [vmem:[#allocation2 + $0x530] sm:$0xf0]  ;;  %v3547_v36 = vor.u32 %v4721_v27, %v3544_v28  ;;  %v3358_v27 = vld [vmem:[#allocation2 + $0x1a8] sm:$0xf] }
  0x8c   :  { %2120 = vmatpush.bf16.msrb.mxu3 %v3995_v53  ;;  %2079 = vmatpush.bf16.msrb.mxu0 %v3595_v60  ;;  %v4785_v32 = vld [vmem:[#allocation2 + $0x524] sm:$0xf]  ;;  %v3928_v35 = vld [vmem:[#allocation2 + $0x630] sm:$0xf0]  ;;  %v3675_v40 = vor.u32 %v4753_v29, %v3672_v31  ;;  %v4676_v28 = vld [vmem:[#allocation2 + $0x1b4] sm:$0xf0] }
  0x8d   :  { %2093 = vmatpush.bf16.msrb.mxu1 %v3723_v61  ;;  %v4817_v34 = vld [vmem:[#allocation2 + $0x624] sm:$0xf]  ;;  %v3528_v38 = vld [vmem:[#allocation2 + $0x310] sm:$0xf0]  ;;  %v3803_v41 = vor.u32 %v4785_v32, %v3800_v33 }
  0x8e   :  { %2107 = vmatpush.bf16.msrb.mxu2 %v3851_v62  ;;  %v4717_v37 = vld [vmem:[#allocation2 + $0x304] sm:$0xf]  ;;  %v3656_v45 = vld [vmem:[#allocation2 + $0x410] sm:$0xf0]  ;;  %v3931_v48 = vor.u32 %v4817_v34, %v3928_v35  ;;  %v3390_v62 = vld [vmem:[#allocation2 + $0x1e8] sm:$0xf]  ;;  %v3359_v35 = vor.u32 %v4676_v28, %v3358_v27 }
  0x8f   :  { %v4749_v42 = vld [vmem:[#allocation2 + $0x404] sm:$0xf]  ;;  %v3784_v49 = vld [vmem:[#allocation2 + $0x510] sm:$0xf0]  ;;  %v3531_v55 = vor.u32 %v4717_v37, %v3528_v38  ;;  %v3391_v8 = vor.u32 %v4684_v63, %v3390_v62  ;;  %v3214_v37 = vld [vmem:[#allocation2 + $0x88] sm:$0xf] }
  0x90   :  { %2121 = vmatpush.bf16.msrb.mxu3 %v3979_v3  ;;  %2080 = vmatpush.bf16.msrb.mxu0 %v3579_v9  ;;  %v4781_v46 = vld [vmem:[#allocation2 + $0x504] sm:$0xf]  ;;  %v3912_v51 = vld [vmem:[#allocation2 + $0x610] sm:$0xf0]  ;;  %v3659_v60 = vor.u32 %v4749_v42, %v3656_v45  ;;  %v4640_v38 = vld [vmem:[#allocation2 + $0x94] sm:$0xf0] }
  0x91   :  { %2094 = vmatpush.bf16.msrb.mxu1 %v3707_v11  ;;  %v4813_v50 = vld [vmem:[#allocation2 + $0x604] sm:$0xf]  ;;  %v4152_v53 = vld [vmem:[#allocation2 + $0x7f0] sm:$0xf0]  ;;  %v3787_v61 = vor.u32 %v4781_v46, %v3784_v49  ;;  %v3246_v11 = vld [vmem:[#allocation2 + $0xc8] sm:$0xf]  ;;  %v3215_v46 = vor.u32 %v4640_v38, %v3214_v37 }
  0x92   :  { %2108 = vmatpush.bf16.msrb.mxu2 %v3835_v12  ;;  %v4873_v52 = vld [vmem:[#allocation2 + $0x7e4] sm:$0xf]  ;;  %v4280_v56 = vld [vmem:[#allocation2 + $0x8f0] sm:$0xf0]  ;;  %v3915_v0 = vor.u32 %v4813_v50, %v3912_v51  ;;  %v4648_v12 = vld [vmem:[#allocation2 + $0xd4] sm:$0xf0] }
  0x93   :  { %v4905_v54 = vld [vmem:[#allocation2 + $0x8e4] sm:$0xf]  ;;  %v4155_v2 = vor.u32 %v4873_v52, %v4152_v53  ;;  %v4136_v6 = vld [vmem:[#allocation2 + $0x7d0] sm:$0xf0]  ;;  %v3247_v18 = vor.u32 %v4648_v12, %v3246_v11  ;;  %v3198_v53 = vld [vmem:[#allocation2 + $0x68] sm:$0xf] }
  0x94   :  { %2122 = vmatpush.bf16.msrb.mxu3 %v3963_v16  ;;  %2081 = vmatpush.bf16.msrb.mxu0 %v3563_v23  ;;  %v4283_v3 = vor.u32 %v4905_v54, %v4280_v56  ;;  %v4869_v5 = vld [vmem:[#allocation2 + $0x7c4] sm:$0xf]  ;;  %v4264_v9 = vld [vmem:[#allocation2 + $0x8d0] sm:$0xf0]  ;;  %v4636_v54 = vld [vmem:[#allocation2 + $0x74] sm:$0xf0] }
  0x95   :  { %2095 = vmatpush.bf16.msrb.mxu1 %v3691_v24  ;;  %v4901_v7 = vld [vmem:[#allocation2 + $0x8c4] sm:$0xf]  ;;  %v4139_v15 = vor.u32 %v4869_v5, %v4136_v6  ;;  %v4120_v20 = vld [vmem:[#allocation2 + $0x7b0] sm:$0xf0]  ;;  %v3230_v24 = vld [vmem:[#allocation2 + $0xa8] sm:$0xf] }
  0x96   :  { %2109 = vmatpush.bf16.msrb.mxu2 %v3819_v26  ;;  %v4267_v16 = vor.u32 %v4901_v7, %v4264_v9  ;;  %v4865_v19 = vld [vmem:[#allocation2 + $0x7a4] sm:$0xf]  ;;  %v4248_v23 = vld [vmem:[#allocation2 + $0x8b0] sm:$0xf0]  ;;  %v4644_v26 = vld [vmem:[#allocation2 + $0xb4] sm:$0xf0] }
  0x97   :  { %v4897_v21 = vld [vmem:[#allocation2 + $0x8a4] sm:$0xf]  ;;  %v4123_v29 = vor.u32 %v4865_v19, %v4120_v20  ;;  %v3231_v31 = vor.u32 %v4644_v26, %v3230_v24  ;;  %v4104_v33 = vld [vmem:[#allocation2 + $0x790] sm:$0xf0]  ;;  %v4668_v56 = vld [vmem:[#allocation2 + $0x174] sm:$0xf0] }
  0x98   :  { %2123 = vmatpush.bf16.msrb.mxu3 %v3947_v30  ;;  %2082 = vmatpush.bf16.msrb.mxu0 %v3547_v36  ;;  %v4251_v30 = vor.u32 %v4897_v21, %v4248_v23  ;;  %v4861_v32 = vld [vmem:[#allocation2 + $0x784] sm:$0xf]  ;;  %v4232_v36 = vld [vmem:[#allocation2 + $0x890] sm:$0xf0]  ;;  %v3310_v5 = vld [vmem:[#allocation2 + $0x148] sm:$0xf] }
  0x99   :  { %2096 = vmatpush.bf16.msrb.mxu1 %v3675_v40  ;;  %v4893_v34 = vld [vmem:[#allocation2 + $0x884] sm:$0xf]  ;;  %v3342_v40 = vld [vmem:[#allocation2 + $0x188] sm:$0xf]  ;;  %v4107_v42 = vor.u32 %v4861_v32, %v4104_v33  ;;  %v4088_v49 = vld [vmem:[#allocation2 + $0x770] sm:$0xf0] }
  0x9a   :  { %2110 = vmatpush.bf16.msrb.mxu2 %v3803_v41  ;;  %v4672_v41 = vld [vmem:[#allocation2 + $0x194] sm:$0xf0]  ;;  %v4235_v45 = vor.u32 %v4893_v34, %v4232_v36  ;;  %v4889_v50 = vld [vmem:[#allocation2 + $0x864] sm:$0xf]  ;;  %v4216_v52 = vld [vmem:[#allocation2 + $0x870] sm:$0xf0] }
  0x9b   :  { %v3343_v51 = vor.u32 %v4672_v41, %v3342_v40  ;;  %v4219_v59 = vor.u32 %v4889_v50, %v4216_v52  ;;  %v4072_v62 = vld [vmem:[#allocation2 + $0x750] sm:$0xf0]  ;;  %v4885_v63 = vld [vmem:[#allocation2 + $0x844] sm:$0xf]  ;;  %v4664_v6 = vld [vmem:[#allocation2 + $0x154] sm:$0xf0] }
  0x9c   :  { %2124 = vmatpush.bf16.msrb.mxu3 %v3931_v48  ;;  %2083 = vmatpush.bf16.msrb.mxu0 %v3531_v55  ;;  %v4857_v48 = vld [vmem:[#allocation2 + $0x764] sm:$0xf]  ;;  %v3326_v55 = vld [vmem:[#allocation2 + $0x168] sm:$0xf]  ;;  %v4056_v12 = vld [vmem:[#allocation2 + $0x730] sm:$0xf0]  ;;  %v3311_v14 = vor.u32 %v4664_v6, %v3310_v5 }
  0x9d   :  { %2097 = vmatpush.bf16.msrb.mxu1 %v3659_v60  ;;  %v4091_v57 = vor.u32 %v4857_v48, %v4088_v49  ;;  %v3199_v60 = vor.u32 %v4636_v54, %v3198_v53  ;;  %v4849_v11 = vld [vmem:[#allocation2 + $0x724] sm:$0xf]  ;;  %v3294_v19 = vld [vmem:[#allocation2 + $0x128] sm:$0xf]  ;;  %v4660_v20 = vld [vmem:[#allocation2 + $0x134] sm:$0xf0] }
  0x9e   :  { %2111 = vmatpush.bf16.msrb.mxu2 %v3787_v61  ;;  %v4853_v61 = vld [vmem:[#allocation2 + $0x744] sm:$0xf]  ;;  %v4059_v21 = vor.u32 %v4849_v11, %v4056_v12  ;;  %v4040_v23 = vld [vmem:[#allocation2 + $0x710] sm:$0xf0]  ;;  %v3278_v32 = vld [vmem:[#allocation2 + $0x108] sm:$0xf] }
  0x9f   :  { %2084 = vmatmul.bf16.vlgmr.msrb.gmra.mxu0 %v5261_v17  ;;  %v4075_v7 = vor.u32 %v4853_v61, %v4072_v62  ;;  %v4881_v13 = vld [vmem:[#allocation2 + $0x824] sm:$0xf]  ;;  %v4168_v28 = vld [vmem:[#allocation2 + $0x810] sm:$0xf0]  ;;  %v4656_v33 = vld [vmem:[#allocation2 + $0x114] sm:$0xf0] }
  0xa0   :  { %2125 = vmatpush.bf16.msrb.mxu3 %v3915_v0  ;;  %2132 = vmatpush.bf16.msra.mxu0 %v4155_v2  ;;  %v3327_v0 = vor.u32 %v4668_v56, %v3326_v55  ;;  %v4200_v2 = vld [vmem:[#allocation2 + $0x850] sm:$0xf0]  ;;  %v4877_v27 = vld [vmem:[#allocation2 + $0x804] sm:$0xf]  ;;  %v3518_v34 = vld [vmem:[#allocation2 + $0x2e8] sm:$0xf]  ;;  %v3279_v49 = vor.u32 %v4656_v33, %v3278_v32 }
  0xa1   :  { %2146 = vmatpush.bf16.msra.mxu1 %v4283_v3  ;;  %2112 = vmatmul.bf16.vlgmr.msrb.gmra.mxu2 %v5293_v44  ;;  %v3182_v3 = vld [vmem:[#allocation2 + $0x48] sm:$0xf]  ;;  %v4748_v38 = vld [vmem:[#allocation2 + $0x3f4] sm:$0xf0] }
  0xa2   :  { %2160 = vmatpush.bf16.msra.mxu2 %v3263_v4  ;;  %2098 = vmatmul.bf16.vlgmr.msrb.gmra.mxu1 %v5289_v39  ;;  %v4632_v4 = vld [vmem:[#allocation2 + $0x54] sm:$0xf0]  ;;  %v3646_v36 = vld [vmem:[#allocation2 + $0x3e8] sm:$0xf] }
  0xa3   :  { %2126 = vmatmul.bf16.vlgmr.msrb.gmra.mxu3 %v5291_v43  ;;  %v3183_v9 = vor.u32 %v4632_v4, %v3182_v3  ;;  %v3774_v40 = vld [vmem:[#allocation2 + $0x4e8] sm:$0xf]  ;;  %v4780_v41 = vld [vmem:[#allocation2 + $0x4f4] sm:$0xf0] }
  0xa4   :  { %2174 = vmatpush.bf16.msra.mxu3 %v3391_v8  ;;  %2133 = vmatpush.bf16.msra.mxu0 %v4139_v15  ;;  %v4203_v8 = vor.u32 %v4885_v63, %v4200_v2  ;;  %v4184_v15 = vld [vmem:[#allocation2 + $0x830] sm:$0xf0]  ;;  %v4812_v48 = vld [vmem:[#allocation2 + $0x5f4] sm:$0xf0]  ;;  %v3775_v52 = vor.u32 %v4780_v41, %v3774_v40  ;;  %v3502_v53 = vld [vmem:[#allocation2 + $0x2c8] sm:$0xf] }
  0xa5   :  { %2147 = vmatpush.bf16.msra.mxu1 %v4267_v16  ;;  %v3166_v16 = vld [vmem:[#allocation2 + $0x28] sm:$0xf]  ;;  %v4187_v24 = vor.u32 %v4881_v13, %v4184_v15  ;;  %v4712_v54 = vld [vmem:[#allocation2 + $0x2d4] sm:$0xf0] }
  0xa6   :  { %2161 = vmatpush.bf16.msra.mxu2 %v3247_v18  ;;  %v4628_v18 = vld [vmem:[#allocation2 + $0x34] sm:$0xf0]  ;;  %v3630_v55 = vld [vmem:[#allocation2 + $0x3c8] sm:$0xf]  ;;  %v3503_v63 = vor.u32 %v4712_v54, %v3502_v53 }
  0xa7   :  { %v3167_v26 = vor.u32 %v4628_v18, %v3166_v16  ;;  %v3886_v61 = vld [vmem:[#allocation2 + $0x5c8] sm:$0xf]  ;;  %v4808_v62 = vld [vmem:[#allocation2 + $0x5d4] sm:$0xf0] }
  0xa8   :  { %2175 = vmatpush.bf16.msra.mxu3 %v3375_v22  ;;  %2134 = vmatpush.bf16.msra.mxu0 %v4123_v29  ;;  %v4845_v22 = vld [vmem:[#allocation2 + $0x704] sm:$0xf]  ;;  %v3150_v29 = vld [vmem:[#allocation2 + $0x8] sm:$0xf]  ;;  %v4708_v4 = vld [vmem:[#allocation2 + $0x2b4] sm:$0xf0]  ;;  %v3887_v6 = vor.u32 %v4808_v62, %v3886_v61 }
  0xa9   :  { %2148 = vmatpush.bf16.msra.mxu1 %v4251_v30  ;;  %v3295_v30 = vor.u32 %v4660_v20, %v3294_v19  ;;  %v4043_v37 = vor.u32 %v4845_v22, %v4040_v23  ;;  %v3486_v3 = vld [vmem:[#allocation2 + $0x2a8] sm:$0xf]  ;;  %v4804_v12 = vld [vmem:[#allocation2 + $0x5b4] sm:$0xf0] }
  0xaa   :  { %2162 = vmatpush.bf16.msra.mxu2 %v3231_v31  ;;  %v4624_v31 = vld [vmem:[#allocation2 + $0x14] sm:$0xf0]  ;;  %v3614_v5 = vld [vmem:[#allocation2 + $0x3a8] sm:$0xf]  ;;  %v3487_v13 = vor.u32 %v4708_v4, %v3486_v3 }
  0xab   :  { %v3870_v11 = vld [vmem:[#allocation2 + $0x5a8] sm:$0xf]  ;;  %v4704_v18 = vld [vmem:[#allocation2 + $0x294] sm:$0xf0] }
  0xac   :  { %2176 = vmatpush.bf16.msra.mxu3 %v3359_v35  ;;  %2135 = vmatpush.bf16.msra.mxu0 %v4107_v42  ;;  %v4716_v35 = vld [vmem:[#allocation2 + $0x2f4] sm:$0xf0]  ;;  %v4171_v42 = vor.u32 %v4877_v27, %v4168_v28  ;;  %v3470_v16 = vld [vmem:[#allocation2 + $0x288] sm:$0xf]  ;;  %v3871_v20 = vor.u32 %v4804_v12, %v3870_v11 }
  0xad   :  { %2149 = vmatpush.bf16.msra.mxu1 %v4235_v45  ;;  %v3151_v45 = vor.u32 %v4624_v31, %v3150_v29  ;;  %v3519_v50 = vor.u32 %v4716_v35, %v3518_v34  ;;  %v3598_v19 = vld [vmem:[#allocation2 + $0x388] sm:$0xf]  ;;  %v4768_v23 = vld [vmem:[#allocation2 + $0x494] sm:$0xf0]  ;;  %v3471_v27 = vor.u32 %v4704_v18, %v3470_v16 }
  0xae   :  { %2163 = vmatpush.bf16.msra.mxu2 %v3215_v46  ;;  %v3902_v46 = vld [vmem:[#allocation2 + $0x5e8] sm:$0xf]  ;;  %v4700_v31 = vld [vmem:[#allocation2 + $0x274] sm:$0xf0] }
  0xaf   :  { %v3903_v56 = vor.u32 %v4812_v48, %v3902_v46  ;;  %v3726_v22 = vld [vmem:[#allocation2 + $0x488] sm:$0xf]  ;;  %v4732_v34 = vld [vmem:[#allocation2 + $0x374] sm:$0xf0] }
  0xb0   :  { %2177 = vmatpush.bf16.msra.mxu3 %v3343_v51  ;;  %2136 = vmatpush.bf16.msra.mxu0 %v4091_v57  ;;  %v3647_v51 = vor.u32 %v4748_v38, %v3646_v36  ;;  %v4744_v57 = vld [vmem:[#allocation2 + $0x3d4] sm:$0xf0]  ;;  %v3727_v29 = vor.u32 %v4768_v23, %v3726_v22  ;;  %v3582_v32 = vld [vmem:[#allocation2 + $0x368] sm:$0xf] }
  0xb1   :  { %2150 = vmatpush.bf16.msra.mxu1 %v4219_v59  ;;  %v3758_v59 = vld [vmem:[#allocation2 + $0x4c8] sm:$0xf]  ;;  %v4764_v36 = vld [vmem:[#allocation2 + $0x474] sm:$0xf0]  ;;  %v3583_v41 = vor.u32 %v4732_v34, %v3582_v32 }
  0xb2   :  { %2164 = vmatpush.bf16.msra.mxu2 %v3199_v60  ;;  %v4776_v60 = vld [vmem:[#allocation2 + $0x4d4] sm:$0xf0]  ;;  %v3710_v35 = vld [vmem:[#allocation2 + $0x468] sm:$0xf] }
  0xb3   :  { %v3759_v2 = vor.u32 %v4776_v60, %v3758_v59  ;;  %v4796_v38 = vld [vmem:[#allocation2 + $0x574] sm:$0xf0]  ;;  %v3566_v48 = vld [vmem:[#allocation2 + $0x348] sm:$0xf] }
  0xb4   :  { %2178 = vmatpush.bf16.msra.mxu3 %v3327_v0  ;;  %2137 = vmatpush.bf16.msra.mxu0 %v4075_v7  ;;  %v3631_v0 = vor.u32 %v4744_v57, %v3630_v55  ;;  %v4740_v7 = vld [vmem:[#allocation2 + $0x3b4] sm:$0xf0]  ;;  %v3822_v53 = vld [vmem:[#allocation2 + $0x548] sm:$0xf] }
  0xb5   :  { %2151 = vmatpush.bf16.msra.mxu1 %v4203_v8  ;;  %v3742_v8 = vld [vmem:[#allocation2 + $0x4a8] sm:$0xf]  ;;  %v4696_v46 = vld [vmem:[#allocation2 + $0x254] sm:$0xf0] }
  0xb6   :  { %2165 = vmatpush.bf16.msra.mxu2 %v3183_v9  ;;  %v4772_v9 = vld [vmem:[#allocation2 + $0x4b4] sm:$0xf0]  ;;  %v3422_v59 = vld [vmem:[#allocation2 + $0x228] sm:$0xf] }
  0xb7   :  { %v3743_v15 = vor.u32 %v4772_v9, %v3742_v8  ;;  %v4792_v54 = vld [vmem:[#allocation2 + $0x554] sm:$0xf0]  ;;  %v3550_v61 = vld [vmem:[#allocation2 + $0x328] sm:$0xf] }
  0xb8   :  { %2179 = vmatpush.bf16.msra.mxu3 %v3311_v14  ;;  %2138 = vmatpush.bf16.msra.mxu0 %v4059_v21  ;;  %v3615_v14 = vor.u32 %v4740_v7, %v3614_v5  ;;  %v4736_v21 = vld [vmem:[#allocation2 + $0x394] sm:$0xf0]  ;;  %v3823_v62 = vor.u32 %v4792_v54, %v3822_v53  ;;  %v3806_v3 = vld [vmem:[#allocation2 + $0x528] sm:$0xf] }
  0xb9   :  { %2152 = vmatpush.bf16.msra.mxu1 %v4187_v24  ;;  %v3854_v24 = vld [vmem:[#allocation2 + $0x588] sm:$0xf]  ;;  %v3599_v28 = vor.u32 %v4736_v21, %v3598_v19  ;;  %v4692_v60 = vld [vmem:[#allocation2 + $0x234] sm:$0xf0] }
  0xba   :  { %2166 = vmatpush.bf16.msra.mxu2 %v3167_v26  ;;  %v4800_v26 = vld [vmem:[#allocation2 + $0x594] sm:$0xf0]  ;;  %v3423_v5 = vor.u32 %v4692_v60, %v3422_v59  ;;  %v3534_v11 = vld [vmem:[#allocation2 + $0x308] sm:$0xf]  ;;  %v4642_v59 = vld [vmem:[#allocation2 + $0xac] sm:$0xf] }
  0xbb   :  { %v3855_v33 = vor.u32 %v4800_v26, %v3854_v24  ;;  %v4788_v4 = vld [vmem:[#allocation2 + $0x534] sm:$0xf0]  ;;  %v3790_v16 = vld [vmem:[#allocation2 + $0x508] sm:$0xf]  ;;  %v3232_v60 = vld [vmem:[#allocation2 + $0xb8] sm:$0xf0] }
  0xbc   :  { %2180 = vmatpush.bf16.msra.mxu3 %v3295_v30  ;;  %2139 = vmatpush.bf16.msra.mxu0 %v4043_v37  ;;  %v3454_v30 = vld [vmem:[#allocation2 + $0x268] sm:$0xf]  ;;  %v4688_v7 = vld [vmem:[#allocation2 + $0x214] sm:$0xf0] }
  0xbd   :  { %2153 = vmatpush.bf16.msra.mxu1 %v4171_v42  ;;  %v3838_v37 = vld [vmem:[#allocation2 + $0x568] sm:$0xf]  ;;  %v3455_v40 = vor.u32 %v4700_v31, %v3454_v30  ;;  %v3711_v42 = vor.u32 %v4764_v36, %v3710_v35  ;;  %v4720_v12 = vld [vmem:[#allocation2 + $0x314] sm:$0xf0]  ;;  %v3264_v30 = vld [vmem:[#allocation2 + $0xf8] sm:$0xf0] }
  0xbe   :  { %2167 = vmatpush.bf16.msra.mxu2 %v3151_v45  ;;  %v3438_v45 = vld [vmem:[#allocation2 + $0x248] sm:$0xf]  ;;  %v4784_v18 = vld [vmem:[#allocation2 + $0x514] sm:$0xf0] }
  0xbf   :  { %2140 = vmatmul.bf16.vlgmr.msra.gmra.mxu0 %v5295_v47  ;;  %v3439_v55 = vor.u32 %v4696_v46, %v3438_v45  ;;  %v4030_v19 = vld [vmem:[#allocation2 + $0x6e8] sm:$0xf]  ;;  %v4876_v23 = vld [vmem:[#allocation2 + $0x7f4] sm:$0xf0]  ;;  %v3791_v31 = vor.u32 %v4784_v18, %v3790_v16  ;;  %v4646_v45 = vld [vmem:[#allocation2 + $0xcc] sm:$0xf] }
  0xc0   :  { %2181 = vmatpush.bf16.msra.mxu3 %v3279_v49  ;;  %2188 = vmatpush.bf16.msrb.mxu0 %v3519_v50  ;;  %v3839_v49 = vor.u32 %v4796_v38, %v3838_v37  ;;  %v4728_v50 = vld [vmem:[#allocation2 + $0x354] sm:$0xf0]  ;;  %v4158_v21 = vld [vmem:[#allocation2 + $0x7e8] sm:$0xf]  ;;  %v3248_v46 = vld [vmem:[#allocation2 + $0xd8] sm:$0xf0] }
  0xc1   :  { %2202 = vmatpush.bf16.msrb.mxu1 %v3647_v51  ;;  %2168 = vmatmul.bf16.vlgmr.msra.gmra.mxu2 %v5238_v58  ;;  %v3694_v51 = vld [vmem:[#allocation2 + $0x448] sm:$0xf]  ;;  %v4908_v26 = vld [vmem:[#allocation2 + $0x8f4] sm:$0xf0]  ;;  %v3251_v54 = vor.u32 %v4646_v45, %v3248_v46 }
  0xc2   :  { %2216 = vmatpush.bf16.msrb.mxu2 %v3775_v52  ;;  %2154 = vmatmul.bf16.vlgmr.msra.gmra.mxu1 %v5307_v25  ;;  %v4760_v52 = vld [vmem:[#allocation2 + $0x454] sm:$0xf0]  ;;  %v4286_v24 = vld [vmem:[#allocation2 + $0x8e8] sm:$0xf] }
  0xc3   :  { %2182 = vmatmul.bf16.vlgmr.msra.gmra.mxu3 %v5256_v10  ;;  %v3695_v57 = vor.u32 %v4760_v52, %v3694_v51  ;;  %v4287_v34 = vor.u32 %v4908_v26, %v4286_v24  ;;  %v4014_v35 = vld [vmem:[#allocation2 + $0x6c8] sm:$0xf]  ;;  %v4840_v36 = vld [vmem:[#allocation2 + $0x6d4] sm:$0xf0] }
  0xc4   :  { %2230 = vmatpush.bf16.msrb.mxu3 %v3903_v56  ;;  %2189 = vmatpush.bf16.msrb.mxu0 %v3503_v63  ;;  %v3567_v56 = vor.u32 %v4728_v50, %v3566_v48  ;;  %v4724_v63 = vld [vmem:[#allocation2 + $0x334] sm:$0xf0]  ;;  %v4142_v37 = vld [vmem:[#allocation2 + $0x7c8] sm:$0xf]  ;;  %v4015_v48 = vor.u32 %v4840_v36, %v4014_v35  ;;  %v4630_v35 = vld [vmem:[#allocation2 + $0x4c] sm:$0xf] }
  0xc5   :  { %2203 = vmatpush.bf16.msrb.mxu1 %v3631_v0  ;;  %v3678_v0 = vld [vmem:[#allocation2 + $0x428] sm:$0xf]  ;;  %v3551_v8 = vor.u32 %v4724_v63, %v3550_v61  ;;  %v4836_v52 = vld [vmem:[#allocation2 + $0x6b4] sm:$0xf0]  ;;  %v3184_v36 = vld [vmem:[#allocation2 + $0x58] sm:$0xf0] }
  0xc6   :  { %2217 = vmatpush.bf16.msrb.mxu2 %v3759_v2  ;;  %v4756_v2 = vld [vmem:[#allocation2 + $0x434] sm:$0xf0]  ;;  %v3998_v51 = vld [vmem:[#allocation2 + $0x6a8] sm:$0xf]  ;;  %v3187_v46 = vor.u32 %v4630_v35, %v3184_v36  ;;  %v4674_v36 = vld [vmem:[#allocation2 + $0x1ac] sm:$0xf] }
  0xc7   :  { %v3679_v9 = vor.u32 %v4756_v2, %v3678_v0  ;;  %v4126_v53 = vld [vmem:[#allocation2 + $0x7a8] sm:$0xf]  ;;  %v3999_v61 = vor.u32 %v4836_v52, %v3998_v51  ;;  %v4832_v2 = vld [vmem:[#allocation2 + $0x694] sm:$0xf0]  ;;  %v4626_v51 = vld [vmem:[#allocation2 + $0x2c] sm:$0xf] }
  0xc8   :  { %2231 = vmatpush.bf16.msrb.mxu3 %v3887_v6  ;;  %2190 = vmatpush.bf16.msrb.mxu0 %v3487_v13  ;;  %v3406_v6 = vld [vmem:[#allocation2 + $0x208] sm:$0xf]  ;;  %v3168_v52 = vld [vmem:[#allocation2 + $0x38] sm:$0xf0] }
  0xc9   :  { %2204 = vmatpush.bf16.msrb.mxu1 %v3615_v14  ;;  %v3662_v13 = vld [vmem:[#allocation2 + $0x408] sm:$0xf]  ;;  %v3807_v14 = vor.u32 %v4788_v4, %v3806_v3  ;;  %v3407_v22 = vor.u32 %v4688_v7, %v3406_v6  ;;  %v3235_v4 = vor.u32 %v4642_v59, %v3232_v60  ;;  %v4896_v7 = vld [vmem:[#allocation2 + $0x894] sm:$0xf0] }
  0xca   :  { %2218 = vmatpush.bf16.msrb.mxu2 %v3743_v15  ;;  %v4752_v15 = vld [vmem:[#allocation2 + $0x414] sm:$0xf0]  ;;  %v3982_v0 = vld [vmem:[#allocation2 + $0x688] sm:$0xf] }
  0xcb   :  { %v4110_v3 = vld [vmem:[#allocation2 + $0x788] sm:$0xf]  ;;  %v4848_v60 = vld [vmem:[#allocation2 + $0x714] sm:$0xf0] }
  0xcc   :  { %2232 = vmatpush.bf16.msrb.mxu3 %v3871_v20  ;;  %2191 = vmatpush.bf16.msrb.mxu0 %v3471_v27  ;;  %v4844_v20 = vld [vmem:[#allocation2 + $0x6f4] sm:$0xf0]  ;;  %v3535_v27 = vor.u32 %v4720_v12, %v3534_v11  ;;  %v4238_v6 = vld [vmem:[#allocation2 + $0x888] sm:$0xf]  ;;  %v3983_v11 = vor.u32 %v4832_v2, %v3982_v0  ;;  %v4622_v0 = vld [vmem:[#allocation2 + $0xc] sm:$0xf] }
  0xcd   :  { %2205 = vmatpush.bf16.msrb.mxu1 %v3599_v28  ;;  %v3663_v28 = vor.u32 %v4752_v15, %v3662_v13  ;;  %v4031_v32 = vor.u32 %v4844_v20, %v4030_v19  ;;  %v4239_v13 = vor.u32 %v4896_v7, %v4238_v6  ;;  %v4828_v15 = vld [vmem:[#allocation2 + $0x674] sm:$0xf0]  ;;  %v4094_v16 = vld [vmem:[#allocation2 + $0x768] sm:$0xf]  ;;  %v3152_v2 = vld [vmem:[#allocation2 + $0x18] sm:$0xf0] }
  0xce   :  { %2219 = vmatpush.bf16.msrb.mxu2 %v3727_v29  ;;  %v4650_v29 = vld [vmem:[#allocation2 + $0xec] sm:$0xf]  ;;  %v4860_v19 = vld [vmem:[#allocation2 + $0x774] sm:$0xf0]  ;;  %v4222_v20 = vld [vmem:[#allocation2 + $0x868] sm:$0xf] }
  0xcf   :  { %v3267_v38 = vor.u32 %v4650_v29, %v3264_v30  ;;  %v4095_v26 = vor.u32 %v4860_v19, %v4094_v16  ;;  %v4824_v29 = vld [vmem:[#allocation2 + $0x654] sm:$0xf0]  ;;  %v4078_v30 = vld [vmem:[#allocation2 + $0x748] sm:$0xf]  ;;  %v3392_v6 = vld [vmem:[#allocation2 + $0x1f8] sm:$0xf0] }
  0xd0   :  { %2233 = vmatpush.bf16.msrb.mxu3 %v3855_v33  ;;  %2192 = vmatpush.bf16.msrb.mxu0 %v3455_v40  ;;  %v4159_v33 = vor.u32 %v4876_v23, %v4158_v21  ;;  %v4872_v40 = vld [vmem:[#allocation2 + $0x7d4] sm:$0xf0]  ;;  %v3200_v23 = vld [vmem:[#allocation2 + $0x78] sm:$0xf0]  ;;  %v4062_v45 = vld [vmem:[#allocation2 + $0x728] sm:$0xf] }
  0xd1   :  { %2206 = vmatpush.bf16.msrb.mxu1 %v3583_v41  ;;  %v4270_v41 = vld [vmem:[#allocation2 + $0x8c8] sm:$0xf]  ;;  %v4892_v21 = vld [vmem:[#allocation2 + $0x874] sm:$0xf0]  ;;  %v4714_v7 = vld [vmem:[#allocation2 + $0x2ec] sm:$0xf] }
  0xd2   :  { %2220 = vmatpush.bf16.msrb.mxu2 %v3711_v42  ;;  %v4904_v42 = vld [vmem:[#allocation2 + $0x8d4] sm:$0xf0]  ;;  %v4046_v59 = vld [vmem:[#allocation2 + $0x708] sm:$0xf]  ;;  %v3776_v16 = vld [vmem:[#allocation2 + $0x4f8] sm:$0xf0] }
  0xd3   :  { %v4271_v50 = vor.u32 %v4904_v42, %v4270_v41  ;;  %v3934_v41 = vld [vmem:[#allocation2 + $0x628] sm:$0xf]  ;;  %v4820_v42 = vld [vmem:[#allocation2 + $0x634] sm:$0xf0] }
  0xd4   :  { %2234 = vmatpush.bf16.msrb.mxu3 %v3839_v49  ;;  %2193 = vmatpush.bf16.msrb.mxu0 %v3439_v55  ;;  %v4143_v49 = vor.u32 %v4872_v40, %v4142_v37  ;;  %v4868_v55 = vld [vmem:[#allocation2 + $0x7b4] sm:$0xf0] }
  0xd5   :  { %2207 = vmatpush.bf16.msrb.mxu1 %v3567_v56  ;;  %v4254_v56 = vld [vmem:[#allocation2 + $0x8a8] sm:$0xf] }
  0xd6   :  { %2221 = vmatpush.bf16.msrb.mxu2 %v3695_v57  ;;  %v4900_v57 = vld [vmem:[#allocation2 + $0x8b4] sm:$0xf0] }
  0xd7   :  { %v4255_v63 = vor.u32 %v4900_v57, %v4254_v56 }
  0xd8   :  { %2235 = vmatpush.bf16.msrb.mxu3 %v3823_v62  ;;  %2194 = vmatpush.bf16.msrb.mxu0 %v3423_v5  ;;  %v4127_v62 = vor.u32 %v4868_v55, %v4126_v53  ;;  %v4864_v5 = vld [vmem:[#allocation2 + $0x794] sm:$0xf0]  ;;  %v3935_v53 = vor.u32 %v4820_v42, %v3934_v41  ;;  %v3488_v41 = vld [vmem:[#allocation2 + $0x2b8] sm:$0xf0]  ;;  %v4738_v42 = vld [vmem:[#allocation2 + $0x3ac] sm:$0xf] }
  0xd9   :  { %2208 = vmatpush.bf16.msrb.mxu1 %v3551_v8  ;;  %v4638_v8 = vld [vmem:[#allocation2 + $0x8c] sm:$0xf]  ;;  %v4111_v12 = vor.u32 %v4864_v5, %v4110_v3  ;;  %v4816_v55 = vld [vmem:[#allocation2 + $0x614] sm:$0xf0]  ;;  %v5325_v3 = vpop.f32.mrf.mxu0 }
  0xda   :  { %2222 = vmatpush.bf16.msrb.mxu2 %v3679_v9  ;;  %v3216_v9 = vld [vmem:[#allocation2 + $0x98] sm:$0xf0]  ;;  %v4682_v5 = vld [vmem:[#allocation2 + $0x1ec] sm:$0xf] }
  0xdb   :  { %v3219_v18 = vor.u32 %v4638_v8, %v3216_v9  ;;  %v3520_v9 = vld [vmem:[#allocation2 + $0x2f8] sm:$0xf0]  ;;  %v3395_v19 = vor.u32 %v4682_v5, %v3392_v6  ;;  %v4666_v6 = vld [vmem:[#allocation2 + $0x16c] sm:$0xf] }
  0xdc   :  { %2236 = vmatpush.bf16.msrb.mxu3 %v3807_v14  ;;  %2195 = vmatpush.bf16.msrb.mxu0 %v3407_v22  ;;  %v3966_v14 = vld [vmem:[#allocation2 + $0x668] sm:$0xf]  ;;  %v4634_v22 = vld [vmem:[#allocation2 + $0x6c] sm:$0xf] }
  0xdd   :  { %2209 = vmatpush.bf16.msrb.mxu1 %v3535_v27  ;;  %v3967_v24 = vor.u32 %v4828_v15, %v3966_v14  ;;  %v4223_v27 = vor.u32 %v4892_v21, %v4222_v20  ;;  %v4778_v15 = vld [vmem:[#allocation2 + $0x4ec] sm:$0xf]  ;;  %v3523_v20 = vor.u32 %v4714_v7, %v3520_v9  ;;  %v3328_v7 = vld [vmem:[#allocation2 + $0x178] sm:$0xf0] }
  0xde   :  { %2223 = vmatpush.bf16.msrb.mxu2 %v3663_v28  ;;  %v3950_v28 = vld [vmem:[#allocation2 + $0x648] sm:$0xf] }
  0xdf   :  { %2196 = vmatmul.bf16.vlgmr.msrb.gmra.mxu0 %v5243_v1  ;;  %v3951_v37 = vor.u32 %v4824_v29, %v3950_v28  ;;  %v4742_v28 = vld [vmem:[#allocation2 + $0x3cc] sm:$0xf]  ;;  %v3632_v29 = vld [vmem:[#allocation2 + $0x3d8] sm:$0xf0] }
  0xe0   :  { %2237 = vmatpush.bf16.msrb.mxu3 %v3791_v31  ;;  %2244 = vmatpush.bf16.msra.mxu0 %v4031_v32  ;;  %v3203_v31 = vor.u32 %v4634_v22, %v3200_v23  ;;  %v4856_v32 = vld [vmem:[#allocation2 + $0x754] sm:$0xf0]  ;;  %v4678_v22 = vld [vmem:[#allocation2 + $0x1cc] sm:$0xf]  ;;  %v3376_v23 = vld [vmem:[#allocation2 + $0x1d8] sm:$0xf0]  ;;  %v3635_v35 = vor.u32 %v4742_v28, %v3632_v29 }
  0xe1   :  { %2258 = vmatpush.bf16.msra.mxu1 %v4159_v33  ;;  %2224 = vmatmul.bf16.vlgmr.msrb.gmra.mxu2 %v5289_v39  ;;  %v4206_v33 = vld [vmem:[#allocation2 + $0x848] sm:$0xf]  ;;  %v3440_v28 = vld [vmem:[#allocation2 + $0x258] sm:$0xf0]  ;;  %v4726_v29 = vld [vmem:[#allocation2 + $0x34c] sm:$0xf] }
  0xe2   :  { %2272 = vmatpush.bf16.msra.mxu2 %v4287_v34  ;;  %2210 = vmatmul.bf16.vlgmr.msrb.gmra.mxu1 %v5261_v17  ;;  %v4888_v34 = vld [vmem:[#allocation2 + $0x854] sm:$0xf0] }
  0xe3   :  { %2238 = vmatmul.bf16.vlgmr.msrb.gmra.mxu3 %v5293_v44  ;;  %v4207_v40 = vor.u32 %v4888_v34, %v4206_v33  ;;  %v3379_v33 = vor.u32 %v4678_v22, %v3376_v23  ;;  %v4662_v23 = vld [vmem:[#allocation2 + $0x14c] sm:$0xf] }
  0xe4   :  { %2286 = vmatpush.bf16.msra.mxu3 %v3267_v38  ;;  %2245 = vmatpush.bf16.msra.mxu0 %v4015_v48  ;;  %v4079_v38 = vor.u32 %v4856_v32, %v4078_v30  ;;  %v4852_v48 = vld [vmem:[#allocation2 + $0x734] sm:$0xf0]  ;;  %v4774_v30 = vld [vmem:[#allocation2 + $0x4cc] sm:$0xf]  ;;  %v5329_v32 = vpop.f32.mrf.mxu2 }
  0xe5   :  { %2259 = vmatpush.bf16.msra.mxu1 %v4143_v49  ;;  %v4190_v49 = vld [vmem:[#allocation2 + $0x828] sm:$0xf]  ;;  %v4063_v56 = vor.u32 %v4852_v48, %v4062_v45  ;;  %v3616_v45 = vld [vmem:[#allocation2 + $0x3b8] sm:$0xf0] }
  0xe6   :  { %2273 = vmatpush.bf16.msra.mxu2 %v4271_v50  ;;  %v4884_v50 = vld [vmem:[#allocation2 + $0x834] sm:$0xf0] }
  0xe7   :  { %v4191_v57 = vor.u32 %v4884_v50, %v4190_v49  ;;  %v4770_v49 = vld [vmem:[#allocation2 + $0x4ac] sm:$0xf]  ;;  %v3744_v50 = vld [vmem:[#allocation2 + $0x4b8] sm:$0xf0] }
  0xe8   :  { %2287 = vmatpush.bf16.msra.mxu3 %v3251_v54  ;;  %2246 = vmatpush.bf16.msra.mxu0 %v3999_v61  ;;  %v3918_v54 = vld [vmem:[#allocation2 + $0x608] sm:$0xf] }
  0xe9   :  { %2260 = vmatpush.bf16.msra.mxu1 %v4127_v62  ;;  %v4174_v61 = vld [vmem:[#allocation2 + $0x808] sm:$0xf]  ;;  %v3171_v62 = vor.u32 %v4626_v51, %v3168_v52  ;;  %v3919_v8 = vor.u32 %v4816_v55, %v3918_v54  ;;  %v5339_v52 = vpop.f32.mrf.mxu3  ;;  %v3619_v54 = vor.u32 %v4738_v42, %v3616_v45  ;;  %v4670_v55 = vld [vmem:[#allocation2 + $0x18c] sm:$0xf]  ;;  %v3424_v45 = vld [vmem:[#allocation2 + $0x238] sm:$0xf0] }
  0xea   :  { %2274 = vmatpush.bf16.msra.mxu2 %v4255_v63  ;;  %v4880_v63 = vld [vmem:[#allocation2 + $0x814] sm:$0xf0] }
  0xeb   :  { %v4175_v14 = vor.u32 %v4880_v63, %v4174_v61  ;;  %v4734_v61 = vld [vmem:[#allocation2 + $0x38c] sm:$0xf] }
  0xec   :  { %2288 = vmatpush.bf16.msra.mxu3 %v3235_v4  ;;  %2247 = vmatpush.bf16.msra.mxu0 %v3983_v11  ;;  %v5327_v4 = vpop.f32.mrf.mxu1  ;;  %v4746_v11 = vld [vmem:[#allocation2 + $0x3ec] sm:$0xf]  ;;  %v5341_v9 = vpop.f32.mrf.mxu2 }
  0xed   :  { %2261 = vmatpush.bf16.msra.mxu1 %v4111_v12  ;;  %v3648_v12 = vld [vmem:[#allocation2 + $0x3f8] sm:$0xf0]  ;;  %v4766_v63 = vld [vmem:[#allocation2 + $0x48c] sm:$0xf] }
  0xee   :  { %2275 = vmatpush.bf16.msra.mxu2 %v4239_v13  ;;  %v4047_v13 = vor.u32 %v4848_v60, %v4046_v59  ;;  %v3651_v21 = vor.u32 %v4746_v11, %v3648_v12  ;;  %v3747_v59 = vor.u32 %v4770_v49, %v3744_v50  ;;  %v3472_v60 = vld [vmem:[#allocation2 + $0x298] sm:$0xf0]  ;;  %v4722_v49 = vld [vmem:[#allocation2 + $0x32c] sm:$0xf] }
  0xef   :  { %v3456_v12 = vld [vmem:[#allocation2 + $0x278] sm:$0xf0] }
  0xf0   :  { %2289 = vmatpush.bf16.msra.mxu3 %v3219_v18  ;;  %2248 = vmatpush.bf16.msra.mxu0 %v3967_v24  ;;  %v3155_v18 = vor.u32 %v4622_v0, %v3152_v2  ;;  %v4710_v24 = vld [vmem:[#allocation2 + $0x2cc] sm:$0xf]  ;;  %v3728_v0 = vld [vmem:[#allocation2 + $0x498] sm:$0xf0] }
  0xf1   :  { %2262 = vmatpush.bf16.msra.mxu1 %v4095_v26  ;;  %v3779_v26 = vor.u32 %v4778_v15, %v3776_v16  ;;  %v3731_v11 = vor.u32 %v4766_v63, %v3728_v0  ;;  %v4762_v15 = vld [vmem:[#allocation2 + $0x46c] sm:$0xf]  ;;  %v3712_v16 = vld [vmem:[#allocation2 + $0x478] sm:$0xf0] }
  0xf2   :  { %2276 = vmatpush.bf16.msra.mxu2 %v4223_v27  ;;  %v3504_v27 = vld [vmem:[#allocation2 + $0x2d8] sm:$0xf0]  ;;  %v4718_v63 = vld [vmem:[#allocation2 + $0x30c] sm:$0xf] }
  0xf3   :  { %v3507_v34 = vor.u32 %v4710_v24, %v3504_v27  ;;  %v3312_v24 = vld [vmem:[#allocation2 + $0x158] sm:$0xf0]  ;;  %v3715_v27 = vor.u32 %v4762_v15, %v3712_v16  ;;  %v4874_v15 = vld [vmem:[#allocation2 + $0x7ec] sm:$0xf] }
  0xf4   :  { %2290 = vmatpush.bf16.msra.mxu3 %v3203_v31  ;;  %2249 = vmatpush.bf16.msra.mxu0 %v3951_v37  ;;  %v3760_v31 = vld [vmem:[#allocation2 + $0x4d8] sm:$0xf0]  ;;  %v5334_v48 = vpop.f32.mrf.mxu1 }
  0xf5   :  { %2263 = vmatpush.bf16.msra.mxu1 %v4079_v38  ;;  %v3360_v37 = vld [vmem:[#allocation2 + $0x1b8] sm:$0xf0]  ;;  %v4706_v38 = vld [vmem:[#allocation2 + $0x2ac] sm:$0xf] }
  0xf6   :  { %2277 = vmatpush.bf16.msra.mxu2 %v4207_v40  ;;  %v3763_v40 = vor.u32 %v4774_v30, %v3760_v31  ;;  %v3363_v51 = vor.u32 %v4674_v36, %v3360_v37  ;;  %v3568_v30 = vld [vmem:[#allocation2 + $0x358] sm:$0xf0]  ;;  %v5347_v31 = vpop.f32.mrf.mxu3 }
  0xf7   :  { %v3571_v37 = vor.u32 %v4726_v29, %v3568_v30  ;;  %v3552_v50 = vld [vmem:[#allocation2 + $0x338] sm:$0xf0]  ;;  %v4806_v30 = vld [vmem:[#allocation2 + $0x5cc] sm:$0xf] }
  0xf8   :  { %2291 = vmatpush.bf16.msra.mxu3 %v3187_v46  ;;  %2250 = vmatpush.bf16.msra.mxu0 %v3935_v53  ;;  %v5332_v46 = vpop.f32.mrf.mxu0  ;;  %v3491_v53 = vor.u32 %v4706_v38, %v3488_v41  ;;  %v4658_v38 = vld [vmem:[#allocation2 + $0x12c] sm:$0xf]  ;;  %v4160_v16 = vld [vmem:[#allocation2 + $0x7f8] sm:$0xf0] }
  0xf9   :  { %2264 = vmatpush.bf16.msra.mxu1 %v4063_v56  ;;  %v3344_v56 = vld [vmem:[#allocation2 + $0x198] sm:$0xf0]  ;;  %v4690_v41 = vld [vmem:[#allocation2 + $0x22c] sm:$0xf]  ;;  %v4163_v29 = vor.u32 %v4874_v15, %v4160_v16 }
  0xfa   :  { %2278 = vmatpush.bf16.msra.mxu2 %v4191_v57  ;;  %v4702_v57 = vld [vmem:[#allocation2 + $0x28c] sm:$0xf]  ;;  %v3347_v2 = vor.u32 %v4670_v55, %v3344_v56  ;;  %v4240_v16 = vld [vmem:[#allocation2 + $0x898] sm:$0xf0] }
  0xfb   :  { %v4654_v56 = vld [vmem:[#allocation2 + $0x10c] sm:$0xf] }
  0xfc   :  { %2292 = vmatpush.bf16.msra.mxu3 %v3171_v62  ;;  %2251 = vmatpush.bf16.msra.mxu0 %v3919_v8  ;;  %v3600_v62 = vld [vmem:[#allocation2 + $0x398] sm:$0xf0]  ;;  %v4698_v8 = vld [vmem:[#allocation2 + $0x26c] sm:$0xf] }
  0xfd   :  { %2265 = vmatpush.bf16.msra.mxu1 %v4047_v13  ;;  %v3603_v5 = vor.u32 %v4734_v61, %v3600_v62  ;;  %v4730_v13 = vld [vmem:[#allocation2 + $0x36c] sm:$0xf]  ;;  %v3408_v62 = vld [vmem:[#allocation2 + $0x218] sm:$0xf0] }
  0xfe   :  { %2279 = vmatpush.bf16.msra.mxu2 %v4175_v14  ;;  %v3584_v14 = vld [vmem:[#allocation2 + $0x378] sm:$0xf0]  ;;  %v4686_v61 = vld [vmem:[#allocation2 + $0x20c] sm:$0xf] }
  0xff   :  { %2252 = vmatmul.bf16.vlgmr.msra.gmra.mxu0 %v5291_v43  ;;  %v3587_v22 = vor.u32 %v4730_v13, %v3584_v14  ;;  %v4032_v14 = vld [vmem:[#allocation2 + $0x6f8] sm:$0xf0]  ;;  %v4894_v15 = vld [vmem:[#allocation2 + $0x88c] sm:$0xf] }
 0x100   :  { %2293 = vmatpush.bf16.msra.mxu3 %v3155_v18  ;;  %2300 = vmatpush.bf16.msrb.mxu0 %v3395_v19  ;;  %v3331_v18 = vor.u32 %v4666_v6, %v3328_v7  ;;  %v5343_v19 = vpop.f32.mrf.mxu0 }
 0x101   :  { %2314 = vmatpush.bf16.msrb.mxu1 %v3523_v20  ;;  %2280 = vmatmul.bf16.vlgmr.msra.gmra.mxu2 %v5307_v25  ;;  %v5345_v20 = vpop.f32.mrf.mxu1 }
 0x102   :  { %2328 = vmatpush.bf16.msrb.mxu2 %v3651_v21  ;;  %2266 = vmatmul.bf16.vlgmr.msra.gmra.mxu1 %v5295_v47  ;;  %v3459_v21 = vor.u32 %v4698_v8, %v3456_v12  ;;  %v4810_v8 = vld [vmem:[#allocation2 + $0x5ec] sm:$0xf] }
 0x103   :  { %2294 = vmatmul.bf16.vlgmr.msra.gmra.mxu3 %v5238_v58  ;;  %v3475_v58 = vor.u32 %v4702_v57, %v3472_v60  ;;  %v3280_v57 = vld [vmem:[#allocation2 + $0x118] sm:$0xf0]  ;;  %v3555_v60 = vor.u32 %v4722_v49, %v3552_v50  ;;  %v4842_v12 = vld [vmem:[#allocation2 + $0x6ec] sm:$0xf] }
 0x104   :  { %2342 = vmatpush.bf16.msrb.mxu3 %v3779_v26  ;;  %2301 = vmatpush.bf16.msrb.mxu0 %v3379_v33  ;;  %v4694_v26 = vld [vmem:[#allocation2 + $0x24c] sm:$0xf]  ;;  %v3283_v13 = vor.u32 %v4654_v56, %v3280_v57  ;;  %v3872_v56 = vld [vmem:[#allocation2 + $0x5b8] sm:$0xf0] }
 0x105   :  { %2315 = vmatpush.bf16.msrb.mxu1 %v3507_v34  ;;  %v4758_v33 = vld [vmem:[#allocation2 + $0x44c] sm:$0xf]  ;;  %v3696_v34 = vld [vmem:[#allocation2 + $0x458] sm:$0xf0]  ;;  %v3443_v36 = vor.u32 %v4694_v26, %v3440_v28  ;;  %v4035_v28 = vor.u32 %v4842_v12, %v4032_v14 }
 0x106   :  { %2329 = vmatpush.bf16.msrb.mxu2 %v3635_v35  ;;  %v3315_v35 = vor.u32 %v4662_v23, %v3312_v24  ;;  %v3699_v42 = vor.u32 %v4758_v33, %v3696_v34  ;;  %v4906_v23 = vld [vmem:[#allocation2 + $0x8ec] sm:$0xf]  ;;  %v4288_v24 = vld [vmem:[#allocation2 + $0x8f8] sm:$0xf0] }
 0x107   :  { %v3888_v33 = vld [vmem:[#allocation2 + $0x5d8] sm:$0xf0]  ;;  %v4838_v34 = vld [vmem:[#allocation2 + $0x6cc] sm:$0xf] }
 0x108   :  { %2343 = vmatpush.bf16.msrb.mxu3 %v3763_v40  ;;  %2302 = vmatpush.bf16.msrb.mxu0 %v3363_v51  ;;  %v3296_v40 = vld [vmem:[#allocation2 + $0x138] sm:$0xf0]  ;;  %v4754_v51 = vld [vmem:[#allocation2 + $0x42c] sm:$0xf]  ;;  %v5351_v6 = vpop.f32.mrf.mxu0 }
 0x109   :  { %2316 = vmatpush.bf16.msrb.mxu1 %v3491_v53  ;;  %v3680_v53 = vld [vmem:[#allocation2 + $0x438] sm:$0xf0]  ;;  %v3299_v55 = vor.u32 %v4658_v38, %v3296_v40  ;;  %v5353_v7 = vpop.f32.mrf.mxu1  ;;  %v4902_v40 = vld [vmem:[#allocation2 + $0x8cc] sm:$0xf] }
 0x10a   :  { %2330 = vmatpush.bf16.msrb.mxu2 %v3619_v54  ;;  %v5349_v54 = vpop.f32.mrf.mxu2  ;;  %v3683_v0 = vor.u32 %v4754_v51, %v3680_v53  ;;  %v4144_v38 = vld [vmem:[#allocation2 + $0x7d8] sm:$0xf0]  ;;  %v4834_v57 = vld [vmem:[#allocation2 + $0x6ac] sm:$0xf] }
 0x10b   :  { %v4830_v12 = vld [vmem:[#allocation2 + $0x68c] sm:$0xf] }
 0x10c   :  { %2344 = vmatpush.bf16.msrb.mxu3 %v3747_v59  ;;  %2303 = vmatpush.bf16.msrb.mxu0 %v3347_v2  ;;  %v3427_v59 = vor.u32 %v4690_v41, %v3424_v45  ;;  %v3536_v2 = vld [vmem:[#allocation2 + $0x318] sm:$0xf0]  ;;  %v3891_v45 = vor.u32 %v4806_v30, %v3888_v33  ;;  %v4862_v14 = vld [vmem:[#allocation2 + $0x78c] sm:$0xf] }
 0x10d   :  { %2317 = vmatpush.bf16.msrb.mxu1 %v3475_v58  ;;  %v4750_v58 = vld [vmem:[#allocation2 + $0x40c] sm:$0xf]  ;;  %v4272_v41 = vld [vmem:[#allocation2 + $0x8d8] sm:$0xf0] }
 0x10e   :  { %2331 = vmatpush.bf16.msrb.mxu2 %v3603_v5  ;;  %v3664_v5 = vld [vmem:[#allocation2 + $0x418] sm:$0xf0]  ;;  %v4858_v30 = vld [vmem:[#allocation2 + $0x76c] sm:$0xf] }
 0x10f   :  { %v3667_v26 = vor.u32 %v4750_v58, %v3664_v5  ;;  %v4096_v33 = vld [vmem:[#allocation2 + $0x778] sm:$0xf0] }
 0x110   :  { %2345 = vmatpush.bf16.msrb.mxu3 %v3731_v11  ;;  %2304 = vmatpush.bf16.msrb.mxu0 %v3331_v18  ;;  %v3904_v11 = vld [vmem:[#allocation2 + $0x5f8] sm:$0xf0]  ;;  %v5355_v18 = vpop.f32.mrf.mxu3  ;;  %v5359_v49 = vpop.f32.mrf.mxu0 }
 0x111   :  { %2318 = vmatpush.bf16.msrb.mxu1 %v3459_v21  ;;  %v3411_v21 = vor.u32 %v4686_v61, %v3408_v62  ;;  %v5361_v50 = vpop.f32.mrf.mxu1  ;;  %v4866_v61 = vld [vmem:[#allocation2 + $0x7ac] sm:$0xf]  ;;  %v4128_v62 = vld [vmem:[#allocation2 + $0x7b8] sm:$0xf0] }
 0x112   :  { %2332 = vmatpush.bf16.msrb.mxu2 %v3587_v22  ;;  %v3539_v22 = vor.u32 %v4718_v63, %v3536_v2  ;;  %v4898_v63 = vld [vmem:[#allocation2 + $0x8ac] sm:$0xf] }
 0x114   :  { %2346 = vmatpush.bf16.msrb.mxu3 %v3715_v27  ;;  %2305 = vmatpush.bf16.msrb.mxu0 %v3315_v35  ;;  %v3907_v27 = vor.u32 %v4810_v8, %v3904_v11  ;;  %v4291_v35 = vor.u32 %v4906_v23, %v4288_v24  ;;  %v4798_v8 = vld [vmem:[#allocation2 + $0x58c] sm:$0xf]  ;;  %v3856_v11 = vld [vmem:[#allocation2 + $0x598] sm:$0xf0] }
 0x115   :  { %2319 = vmatpush.bf16.msrb.mxu1 %v3443_v36  ;;  %v4016_v36 = vld [vmem:[#allocation2 + $0x6d8] sm:$0xf0]  ;;  %v4794_v24 = vld [vmem:[#allocation2 + $0x56c] sm:$0xf] }
 0x116   :  { %2333 = vmatpush.bf16.msrb.mxu2 %v3571_v37  ;;  %v4870_v37 = vld [vmem:[#allocation2 + $0x7cc] sm:$0xf]  ;;  %v4019_v51 = vor.u32 %v4838_v34, %v4016_v36 }
 0x117   :  { %v4147_v53 = vor.u32 %v4870_v37, %v4144_v38  ;;  %v4890_v36 = vld [vmem:[#allocation2 + $0x86c] sm:$0xf]  ;;  %v4224_v37 = vld [vmem:[#allocation2 + $0x878] sm:$0xf0] }
 0x118   :  { %2347 = vmatpush.bf16.msrb.mxu3 %v3699_v42  ;;  %2306 = vmatpush.bf16.msrb.mxu0 %v3299_v55  ;;  %v5357_v42 = vpop.f32.mrf.mxu2  ;;  %v4802_v55 = vld [vmem:[#allocation2 + $0x5ac] sm:$0xf]  ;;  %v5367_v58 = vpop.f32.mrf.mxu3 }
 0x119   :  { %2320 = vmatpush.bf16.msrb.mxu1 %v3427_v59  ;;  %v4275_v59 = vor.u32 %v4902_v40, %v4272_v41  ;;  %v3875_v2 = vor.u32 %v4802_v55, %v3872_v56  ;;  %v5371_v34 = vpop.f32.mrf.mxu0  ;;  %v4822_v55 = vld [vmem:[#allocation2 + $0x64c] sm:$0xf]  ;;  %v4227_v56 = vor.u32 %v4890_v36, %v4224_v37  ;;  %v3920_v36 = vld [vmem:[#allocation2 + $0x618] sm:$0xf0] }
 0x11a   :  { %2334 = vmatpush.bf16.msrb.mxu2 %v3555_v60  ;;  %v4000_v60 = vld [vmem:[#allocation2 + $0x6b8] sm:$0xf0] }
 0x11b   :  { %v4003_v5 = vor.u32 %v4834_v57, %v4000_v60  ;;  %v3952_v57 = vld [vmem:[#allocation2 + $0x658] sm:$0xf0] }
 0x11c   :  { %2348 = vmatpush.bf16.msrb.mxu3 %v3683_v0  ;;  %2307 = vmatpush.bf16.msrb.mxu0 %v3283_v13  ;;  %v4256_v0 = vld [vmem:[#allocation2 + $0x8b8] sm:$0xf0] }
 0x11d   :  { %2321 = vmatpush.bf16.msrb.mxu1 %v3411_v21  ;;  %v4259_v13 = vor.u32 %v4898_v63, %v4256_v0  ;;  %v4080_v60 = vld [vmem:[#allocation2 + $0x758] sm:$0xf0]  ;;  %v5377_v63 = vld [vmem:[#allocation4] sm:$0xf] }
 0x11e   :  { %2335 = vmatpush.bf16.msrb.mxu2 %v3539_v22 }
 0x11f   :  { %2308 = vmatmul.bf16.vlgmr.msrb.gmra.mxu0 %v5256_v10  ;;  %v4131_v10 = vor.u32 %v4866_v61, %v4128_v62  ;;  %v4886_v61 = vld [vmem:[#allocation2 + $0x84c] sm:$0xf]  ;;  %v4208_v62 = vld [vmem:[#allocation2 + $0x858] sm:$0xf0] }
 0x120   :  { %2349 = vmatpush.bf16.msrb.mxu3 %v3667_v26  ;;  %2356 = vmatpush.bf16.msra.mxu0 %v3907_v27  ;;  %v5369_v21 = vpop.f32.mrf.mxu2  ;;  %v3840_v26 = vld [vmem:[#allocation2 + $0x578] sm:$0xf0]  ;;  %v4826_v27 = vld [vmem:[#allocation2 + $0x66c] sm:$0xf]  ;;  %v5375_v40 = vpop.f32.mrf.mxu3 }
 0x121   :  { %2370 = vmatpush.bf16.msra.mxu1 %v4035_v28  ;;  %2336 = vmatmul.bf16.vlgmr.msrb.gmra.mxu2 %v5261_v17  ;;  %v3984_v17 = vld [vmem:[#allocation2 + $0x698] sm:$0xf0]  ;;  %v4243_v28 = vor.u32 %v4894_v15, %v4240_v16  ;;  %v3843_v38 = vor.u32 %v4794_v24, %v3840_v26  ;;  %v5380_v16 = vpop.f32.mrf.mxu0  ;;  %v4782_v26 = vld [vmem:[#allocation2 + $0x50c] sm:$0xf] }
 0x122   :  { %2384 = vmatpush.bf16.msra.mxu2 %v4163_v29  ;;  %2322 = vmatmul.bf16.vlgmr.msrb.gmra.mxu1 %v5243_v1  ;;  %v4112_v1 = vld [vmem:[#allocation2 + $0x798] sm:$0xf0]  ;;  %v3987_v22 = vor.u32 %v4830_v12, %v3984_v17  ;;  %v4211_v12 = vor.u32 %v4886_v61, %v4208_v62  ;;  %v4850_v17 = vld [vmem:[#allocation2 + $0x72c] sm:$0xf] }
 0x123   :  { %2350 = vmatmul.bf16.vlgmr.msrb.gmra.mxu3 %v5289_v39  ;;  %v3859_v39 = vor.u32 %v4798_v8, %v3856_v11  ;;  %v4115_v23 = vor.u32 %v4862_v14, %v4112_v1  ;;  %v3968_v29 = vld [vmem:[#allocation2 + $0x678] sm:$0xf0]  ;;  %v4818_v11 = vld [vmem:[#allocation2 + $0x62c] sm:$0xf]  ;;  %v414_v1 = vperm.slane %v5377_v63, 0 }
 0x124   :  { %2398 = vmatpush.bf16.msra.mxu3 %v4291_v35  ;;  %2357 = vmatpush.bf16.msra.mxu0 %v3891_v45  ;;  %v5373_v35 = vpop.f32.mrf.mxu1  ;;  %v3971_v41 = vor.u32 %v4826_v27, %v3968_v29  ;;  %v4099_v45 = vor.u32 %v4858_v30, %v4096_v33  ;;  %v3808_v8 = vld [vmem:[#allocation2 + $0x538] sm:$0xf0]  ;;  %v4814_v33 = vld [vmem:[#allocation2 + $0x60c] sm:$0xf] }
 0x125   :  { %2371 = vmatpush.bf16.msra.mxu1 %v4019_v51  ;;  %v4790_v51 = vld [vmem:[#allocation2 + $0x54c] sm:$0xf]  ;;  %v4064_v14 = vld [vmem:[#allocation2 + $0x738] sm:$0xf0] }
 0x126   :  { %2385 = vmatpush.bf16.msra.mxu2 %v4147_v53  ;;  %v3824_v53 = vld [vmem:[#allocation2 + $0x558] sm:$0xf0]  ;;  %v4067_v29 = vor.u32 %v4850_v17, %v4064_v14  ;;  %v4406_v14 = vld [vmem:[#allocation6 + $0xe0] sm:$0xf] }
 0x127   :  { %v3827_v0 = vor.u32 %v4790_v51, %v3824_v53  ;;  %v3792_v30 = vld [vmem:[#allocation2 + $0x518] sm:$0xf0]  ;;  %v1918_v51 = vadd.f32 %v5325_v3, %v414_v1  ;;  %v1920_v53 = vadd.f32 %v5332_v46, %v414_v1  ;;  %v4938_v1 = vld [vmem:[#allocation6 + $0xe4] sm:$0xf0] }
 0x128   :  { %2399 = vmatpush.bf16.msra.mxu3 %v4275_v59  ;;  %2358 = vmatpush.bf16.msra.mxu0 %v3875_v2  ;;  %v4854_v59 = vld [vmem:[#allocation2 + $0x74c] sm:$0xf]  ;;  %v3955_v2 = vor.u32 %v4822_v55, %v3952_v57  ;;  %v2059_v15 = vpop.f32.mrf.mxu2  ;;  %v2073_v55 = vpop.f32.mrf.mxu3  ;;  %v4350_v57 = vld [vmem:[#allocation6 + $0x70] sm:$0xf]  ;;  %v3795_v62 = vor.u32 %v4782_v26, %v3792_v30  ;;  %v4920_v26 = vld [vmem:[#allocation6 + $0x54] sm:$0xf0] }
 0x129   :  { %2372 = vmatpush.bf16.msra.mxu1 %v4003_v5  ;;  %v4083_v5 = vor.u32 %v4854_v59, %v4080_v60  ;;  %v4924_v59 = vld [vmem:[#allocation6 + $0x74] sm:$0xf0]  ;;  %v1932_v46 = vadd.f32 %v5327_v4, %v1918_v51  ;;  %v4398_v30 = vld [vmem:[#allocation6 + $0xd0] sm:$0xf] }
 0x12a   :  { %2386 = vmatpush.bf16.msra.mxu2 %v4131_v10  ;;  %v4786_v10 = vld [vmem:[#allocation2 + $0x52c] sm:$0xf] }
 0x12b   :  { %v3811_v24 = vor.u32 %v4786_v10, %v3808_v8  ;;  %v4351_v8 = vor.u32 %v4924_v59, %v4350_v57  ;;  %v1946_v4 = vadd.f32 %v5329_v32, %v1932_v46  ;;  %v4318_v57 = vld [vmem:[#allocation6 + $0x30] sm:$0xf]  ;;  %v4916_v59 = vld [vmem:[#allocation6 + $0x34] sm:$0xf0]  ;;  %v4310_v46 = vld [vmem:[#allocation6 + $0x20] sm:$0xf] }
 0x12c   :  { %2400 = vmatpush.bf16.msra.mxu3 %v4259_v13  ;;  %2359 = vmatpush.bf16.msra.mxu0 %v3859_v39  ;;  %v3936_v13 = vld [vmem:[#allocation2 + $0x638] sm:$0xf0]  ;;  %v4882_v39 = vld [vmem:[#allocation2 + $0x82c] sm:$0xf]  ;;  %v5383_v27 = vpop.f32.mrf.mxu1 }
 0x12d   :  { %2373 = vmatpush.bf16.msra.mxu1 %v3987_v22  ;;  %v4192_v22 = vld [vmem:[#allocation2 + $0x838] sm:$0xf0] }
 0x12e   :  { %2387 = vmatpush.bf16.msra.mxu2 %v4115_v23  ;;  %v415_v23 = vperm.slane %v5377_v63, 1  ;;  %v4195_v37 = vor.u32 %v4882_v39, %v4192_v22  ;;  %v2087_v22 = vpop.f32.mrf.mxu0 }
 0x130   :  { %2401 = vmatpush.bf16.msra.mxu3 %v4243_v28  ;;  %2360 = vmatpush.bf16.msra.mxu0 %v3843_v38  ;;  %v3939_v28 = vor.u32 %v4818_v11, %v3936_v13  ;;  %v4846_v38 = vld [vmem:[#allocation2 + $0x70c] sm:$0xf]  ;;  %v2044_v60 = vadd.f32 %v5361_v50, %v415_v23  ;;  %v2046_v61 = vadd.f32 %v5373_v35, %v415_v23  ;;  %v4342_v13 = vld [vmem:[#allocation6 + $0x60] sm:$0xf]  ;;  %v5392_v39 = vpop.f32.mrf.mxu2 }
 0x131   :  { %2374 = vmatpush.bf16.msra.mxu1 %v3971_v41  ;;  %v4048_v41 = vld [vmem:[#allocation2 + $0x718] sm:$0xf0]  ;;  %v1934_v11 = vadd.f32 %v5334_v48, %v1920_v53  ;;  %v4922_v50 = vld [vmem:[#allocation6 + $0x64] sm:$0xf0] }
 0x132   :  { %2388 = vmatpush.bf16.msra.mxu2 %v4099_v45  ;;  %v4878_v45 = vld [vmem:[#allocation2 + $0x80c] sm:$0xf]  ;;  %v4051_v10 = vor.u32 %v4846_v38, %v4048_v41  ;;  %v2058_v35 = vadd.f32 %v5369_v21, %v2044_v60  ;;  %v2060_v17 = vadd.f32 %v2059_v15, %v2046_v61  ;;  %v4343_v23 = vor.u32 %v4922_v50, %v4342_v13  ;;  %v4334_v15 = vld [vmem:[#allocation6 + $0x50] sm:$0xf]  ;;  %v4326_v38 = vld [vmem:[#allocation6 + $0x40] sm:$0xf] }
 0x133   :  { %v1948_v48 = vadd.f32 %v5341_v9, %v1934_v11  ;;  %v4407_v21 = vor.u32 %v4938_v1, %v4406_v14  ;;  %v4335_v32 = vor.u32 %v4920_v26, %v4334_v15  ;;  %v1960_v9 = vadd.f32 %v5339_v52, %v1946_v4  ;;  %v4382_v61 = vld [vmem:[#allocation6 + $0xb0] sm:$0xf]  ;;  %v4914_v11 = vld [vmem:[#allocation6 + $0x24] sm:$0xf0]  ;;  %v4374_v13 = vld [vmem:[#allocation6 + $0xa0] sm:$0xf] }
 0x134   :  { %2402 = vmatpush.bf16.msra.mxu3 %v4227_v56  ;;  %2361 = vmatpush.bf16.msra.mxu0 %v3827_v0  ;;  %v4176_v56 = vld [vmem:[#allocation2 + $0x818] sm:$0xf0]  ;;  %v4414_v0 = vld [vmem:[#allocation6 + $0xf0] sm:$0xf]  ;;  %v4930_v50 = vld [vmem:[#allocation6 + $0xa4] sm:$0xf0]  ;;  %v4311_v1 = vor.u32 %v4914_v11, %v4310_v46 }
 0x135   :  { %2375 = vmatpush.bf16.msra.mxu1 %v3955_v2  ;;  %v4940_v2 = vld [vmem:[#allocation6 + $0xf4] sm:$0xf0]  ;;  %v4179_v3 = vor.u32 %v4878_v45, %v4176_v56  ;;  %v4390_v45 = vld [vmem:[#allocation6 + $0xc0] sm:$0xf]  ;;  %v4302_v4 = vld [vmem:[#allocation6 + $0x10] sm:$0xf] }
 0x136   :  { %2389 = vmatpush.bf16.msra.mxu2 %v4083_v5  ;;  %v3923_v5 = vor.u32 %v4814_v33, %v3920_v36  ;;  %v4936_v33 = vld [vmem:[#allocation6 + $0xd4] sm:$0xf0]  ;;  %v2127_v36 = vpop.f32.mrf.mxu3  ;;  %v4366_v15 = vld [vmem:[#allocation6 + $0x90] sm:$0xf]  ;;  %v4946_v46 = vld [vmem:[#allocation6 + $0x124] sm:$0xf0] }
 0x137   :  { %v4928_v26 = vld [vmem:[#allocation6 + $0x94] sm:$0xf0] }
 0x138   :  { %2403 = vmatpush.bf16.msra.mxu3 %v4211_v12  ;;  %2362 = vmatpush.bf16.msra.mxu0 %v3811_v24  ;;  %v4415_v12 = vor.u32 %v4940_v2, %v4414_v0  ;;  %v2101_v24 = vpop.f32.mrf.mxu1  ;;  %v2115_v56 = vpop.f32.mrf.mxu2  ;;  %v4319_v2 = vor.u32 %v4916_v59, %v4318_v57 }
 0x139   :  { %2376 = vmatpush.bf16.msra.mxu1 %v3939_v28  ;;  %v2072_v28 = vadd.f32 %v5375_v40, %v2058_v35  ;;  %v4918_v40 = vld [vmem:[#allocation6 + $0x44] sm:$0xf0] }
 0x13a   :  { %2390 = vmatpush.bf16.msra.mxu2 %v4067_v29  ;;  %v2074_v29 = vadd.f32 %v2073_v55, %v2060_v17  ;;  %v4327_v53 = vor.u32 %v4918_v40, %v4326_v38  ;;  %v4358_v38 = vld [vmem:[#allocation6 + $0x80] sm:$0xf] }
 0x13b   :  { %v2086_v41 = vadd.f32 %v5380_v16, %v2072_v28 }
 0x13c   :  { %2404 = vmatpush.bf16.msra.mxu3 %v4195_v37  ;;  %2363 = vmatpush.bf16.msra.mxu0 %v3795_v62  ;;  %v4399_v37 = vor.u32 %v4936_v33, %v4398_v30  ;;  %v2141_v51 = vpop.f32.mrf.mxu0  ;;  %v4932_v62 = vld [vmem:[#allocation6 + $0xb4] sm:$0xf0]  ;;  %v4462_v33 = vld [vmem:[#allocation6 + $0x150] sm:$0xf] }
 0x13d   :  { %2377 = vmatpush.bf16.msra.mxu1 %v3923_v5  ;;  %v2100_v60 = vadd.f32 %v5383_v27, %v2086_v41  ;;  %v4478_v5 = vld [vmem:[#allocation6 + $0x170] sm:$0xf] }
 0x13e   :  { %2391 = vmatpush.bf16.msra.mxu2 %v4051_v10  ;;  %v4956_v10 = vld [vmem:[#allocation6 + $0x174] sm:$0xf0] }
 0x13f   :  { %2364 = vmatmul.bf16.vlgmr.msra.gmra.mxu0 %v5293_v44  ;;  %v1962_v44 = vadd.f32 %v5347_v31, %v1948_v48  ;;  %v2114_v27 = vadd.f32 %v5392_v39, %v2100_v60  ;;  %v4912_v48 = vld [vmem:[#allocation6 + $0x14] sm:$0xf0] }
 0x140   :  { %2405 = vmatpush.bf16.msra.mxu3 %v4179_v3  ;;  %2814 = vmatpush.bf16.msrb.mxu0 %v4351_v8  ;;  %v5406_v31 = vpop.f32.mrf.mxu1  ;;  %v2129_v3 = vpop.f32.mrf.mxu3  ;;  %v4383_v8 = vor.u32 %v4932_v62, %v4382_v61  ;;  %v4303_v30 = vor.u32 %v4912_v48, %v4302_v4  ;;  %v4921_v61 = vld [vmem:[#allocation6 + $0x64] sm:$0xf]  ;;  %v4344_v62 = vld [vmem:[#allocation6 + $0x68] sm:$0xf0]  ;;  %v4430_v48 = vld [vmem:[#allocation6 + $0x110] sm:$0xf] }
 0x141   :  { %2828 = vmatpush.bf16.msrb.mxu1 %v4415_v12  ;;  %2392 = vmatmul.bf16.vlgmr.msra.gmra.mxu2 %v5295_v47  ;;  %v4934_v47 = vld [vmem:[#allocation6 + $0xc4] sm:$0xf0]  ;;  %v1976_v55 = vadd.f32 %v5351_v6, %v1962_v44  ;;  %v4479_v12 = vor.u32 %v4956_v10, %v4478_v5  ;;  %v4367_v44 = vor.u32 %v4928_v26, %v4366_v15  ;;  %v4948_v10 = vld [vmem:[#allocation6 + $0x134] sm:$0xf0] }
 0x142   :  { %2378 = vmatmul.bf16.vlgmr.msra.gmra.mxu1 %v5291_v43  ;;  %v2088_v43 = vadd.f32 %v2087_v22, %v2074_v29  ;;  %v4391_v52 = vor.u32 %v4934_v47, %v4390_v45  ;;  %v4954_v22 = vld [vmem:[#allocation6 + $0x164] sm:$0xf0]  ;;  %v4352_v45 = vld [vmem:[#allocation6 + $0x78] sm:$0xf0] }
 0x143   :  { %2406 = vmatmul.bf16.vlgmr.msra.gmra.mxu3 %v5307_v25  ;;  %v1974_v25 = vadd.f32 %v5343_v19, %v1960_v9  ;;  %v1990_v6 = vadd.f32 %v5353_v7, %v1976_v55  ;;  %2842 = vmatpush.bf16.msrb.mxu2 %v4479_v12  ;;  %v4950_v55 = vld [vmem:[#allocation6 + $0x144] sm:$0xf0] }
 0x144   :  { %2815 = vmatpush.bf16.msrb.mxu0 %v4343_v23  ;;  %v2102_v16 = vadd.f32 %v2101_v24, %v2088_v43  ;;  %v2143_v17 = vpop.f32.mrf.mxu0  ;;  %v4375_v23 = vor.u32 %v4930_v50, %v4374_v13  ;;  %v4926_v43 = vld [vmem:[#allocation6 + $0x84] sm:$0xf0]  ;;  %v4336_v13 = vld [vmem:[#allocation6 + $0x58] sm:$0xf0]  ;;  %v4935_v50 = vld [vmem:[#allocation6 + $0xd4] sm:$0xf]  ;;  %v2169_v4 = vpop.f32.mrf.mxu2 }
 0x145   :  { %2829 = vmatpush.bf16.msrb.mxu1 %v4407_v21  ;;  %v1988_v19 = vadd.f32 %v5345_v20, %v1974_v25  ;;  %v2004_v35 = vadd.f32 %v5357_v42, %v1990_v6  ;;  %v4470_v20 = vld [vmem:[#allocation6 + $0x160] sm:$0xf]  ;;  %v2128_v21 = vadd.f32 %v2127_v36, %v2114_v27  ;;  %v4910_v36 = vld [vmem:[#allocation6 + $0x4] sm:$0xf0]  ;;  %v4347_v6 = vor.u32 %v4921_v61, %v4344_v62  ;;  %v4919_v27 = vld [vmem:[#allocation6 + $0x54] sm:$0xf] }
 0x146   :  { %v2116_v0 = vadd.f32 %v2115_v56, %v2102_v16  ;;  %v4471_v24 = vor.u32 %v4954_v22, %v4470_v20  ;;  %v4917_v20 = vld [vmem:[#allocation6 + $0x44] sm:$0xf]  ;;  %v4328_v22 = vld [vmem:[#allocation6 + $0x48] sm:$0xf0]  ;;  %v4464_v61 = vld [vmem:[#allocation6 + $0x158] sm:$0xf0] }
 0x147   :  { %v2002_v7 = vadd.f32 %v5349_v54, %v1988_v19  ;;  %v2018_v42 = vadd.f32 %v5367_v58, %v2004_v35  ;;  %v2142_v29 = vadd.f32 %v2141_v51, %v2128_v21  ;;  %v4923_v58 = vld [vmem:[#allocation6 + $0x74] sm:$0xf]  ;;  %v4400_v35 = vld [vmem:[#allocation6 + $0xd8] sm:$0xf0]  ;;  %v4331_v21 = vor.u32 %v4917_v20, %v4328_v22  ;;  %v4945_v20 = vld [vmem:[#allocation6 + $0x124] sm:$0xf] }
 0x148   :  { %2816 = vmatpush.bf16.msrb.mxu0 %v4335_v32  ;;  %v2130_v14 = vadd.f32 %v2129_v3, %v2116_v0  ;;  %v2157_v28 = vpop.f32.mrf.mxu1  ;;  %2843 = vmatpush.bf16.msrb.mxu2 %v4471_v24  ;;  %v4952_v32 = vld [vmem:[#allocation6 + $0x154] sm:$0xf0]  ;;  %v4939_v51 = vld [vmem:[#allocation6 + $0xf4] sm:$0xf]  ;;  %v4355_v57 = vor.u32 %v4923_v58, %v4352_v45  ;;  %v4376_v58 = vld [vmem:[#allocation6 + $0xa8] sm:$0xf0] }
 0x149   :  { %2830 = vmatpush.bf16.msrb.mxu1 %v4399_v37  ;;  %v2016_v54 = vadd.f32 %v5355_v18, %v2002_v7  ;;  %v2032_v9 = vadd.f32 %v5371_v34, %v2018_v42  ;;  %v4294_v37 = vld [vmem:[#allocation6] sm:$0xf]  ;;  %v4463_v40 = vor.u32 %v4952_v32, %v4462_v33  ;;  %v2156_v25 = vadd.f32 %v5406_v31, %v2142_v29  ;;  %v4446_v31 = vld [vmem:[#allocation6 + $0x130] sm:$0xf]  ;;  %v4933_v7 = vld [vmem:[#allocation6 + $0xc4] sm:$0xf] }
 0x14a   :  { %v2144_v39 = vadd.f32 %v2143_v17, %v2130_v14  ;;  %v4295_v18 = vor.u32 %v4910_v36, %v4294_v37  ;;  %v4454_v34 = vld [vmem:[#allocation6 + $0x140] sm:$0xf]  ;;  %v4447_v3 = vor.u32 %v4948_v10, %v4446_v31  ;;  %v4339_v14 = vor.u32 %v4919_v27, %v4336_v13  ;;  %v4944_v24 = vld [vmem:[#allocation6 + $0x114] sm:$0xf0]  ;;  %v4320_v42 = vld [vmem:[#allocation6 + $0x38] sm:$0xf0]  ;;  %v2183_v37 = vpop.f32.mrf.mxu3 }
 0x14b   :  { %v2030_v47 = vadd.f32 %v5359_v49, %v2016_v54  ;;  %v2416_v56 = vmax.f32 %v2032_v9, 0.0  ;;  %v4455_v59 = vor.u32 %v4950_v55, %v4454_v34  ;;  %v4937_v49 = vld [vmem:[#allocation6 + $0xe4] sm:$0xf]  ;;  %v2413_v5 = vmax.f32 %v2156_v25, 0.0  ;;  %v4942_v29 = vld [vmem:[#allocation6 + $0x104] sm:$0xf0] }
 0x14c   :  { %2817 = vmatpush.bf16.msrb.mxu0 %v4327_v53  ;;  %v2158_v41 = vadd.f32 %v2157_v28, %v2144_v39  ;;  %v4416_v53 = vld [vmem:[#allocation6 + $0xf8] sm:$0xf0]  ;;  %2844 = vmatpush.bf16.msrb.mxu2 %v4463_v40  ;;  %v4915_v39 = vld [vmem:[#allocation6 + $0x34] sm:$0xf]  ;;  %v4431_v15 = vor.u32 %v4944_v24, %v4430_v48  ;;  %v4422_v28 = vld [vmem:[#allocation6 + $0x100] sm:$0xf] }
 0x14d   :  { %2831 = vmatpush.bf16.msrb.mxu1 %v4391_v52  ;;  %v4359_v52 = vor.u32 %v4926_v43, %v4358_v38  ;;  %v4419_v16 = vor.u32 %v4939_v51, %v4416_v53  ;;  %v2412_v0 = vmax.f32 %v2030_v47, 0.0  ;;  %v4384_v33 = vld [vmem:[#allocation6 + $0xb8] sm:$0xf0]  ;;  %v4423_v32 = vor.u32 %v4942_v29, %v4422_v28  ;;  %v4955_v9 = vld [vmem:[#allocation6 + $0x174] sm:$0xf]  ;;  %v2171_v53 = vpop.f32.mrf.mxu2 }
 0x14e   :  { %v2417_v60 = vmax.f32 %v2158_v41, 0.0  ;;  %v4323_v54 = vor.u32 %v4915_v39, %v4320_v42  ;;  %v4913_v38 = vld [vmem:[#allocation6 + $0x24] sm:$0xf]  ;;  %v4312_v40 = vld [vmem:[#allocation6 + $0x28] sm:$0xf0] }
 0x14f   :  { %v5419_v19 = vpack.c.bf16 %v2416_v56, %v2412_v0  ;;  %v4929_v43 = vld [vmem:[#allocation6 + $0xa4] sm:$0xf]  ;;  %v4315_v45 = vor.u32 %v4913_v38, %v4312_v40  ;;  %v4472_v51 = vld [vmem:[#allocation6 + $0x168] sm:$0xf0]  ;;  %v4304_v34 = vld [vmem:[#allocation6 + $0x18] sm:$0xf0] }
 0x150   :  { %2818 = vmatpush.bf16.msrb.mxu0 %v4319_v2  ;;  %v4408_v2 = vld [vmem:[#allocation6 + $0xe8] sm:$0xf0]  ;;  %2845 = vmatpush.bf16.msrb.mxu2 %v4455_v59  ;;  %v5421_v11 = vpack.c.bf16 %v2417_v60, %v2413_v5  ;;  %v4953_v47 = vld [vmem:[#allocation6 + $0x164] sm:$0xf]  ;;  %v4379_v25 = vor.u32 %v4929_v43, %v4376_v58  ;;  %v4927_v56 = vld [vmem:[#allocation6 + $0x94] sm:$0xf] }
 0x151   :  { %2832 = vmatpush.bf16.msrb.mxu1 %v4383_v8  ;;  %v4438_v8 = vld [vmem:[#allocation6 + $0x120] sm:$0xf]  ;;  %v4411_v12 = vor.u32 %v4937_v49, %v4408_v2  ;;  %v4475_v55 = vor.u32 %v4953_v47, %v4472_v51  ;;  %v4909_v49 = vld [vmem:[#allocation6 + $0x4] sm:$0xf]  ;;  %v4296_v2 = vld [vmem:[#allocation6 + $0x8] sm:$0xf0] }
 0x152   :  { %v4439_v17 = vor.u32 %v4946_v46, %v4438_v8  ;;  %v4925_v31 = vld [vmem:[#allocation6 + $0x84] sm:$0xf]  ;;  %v4360_v10 = vld [vmem:[#allocation6 + $0x88] sm:$0xf0]  ;;  %v4299_v8 = vor.u32 %v4909_v49, %v4296_v2  ;;  %v4943_v42 = vld [vmem:[#allocation6 + $0x114] sm:$0xf] }
 0x153   :  { %v4949_v46 = vld [vmem:[#allocation6 + $0x144] sm:$0xf]  ;;  %v4363_v27 = vor.u32 %v4925_v31, %v4360_v10  ;;  %v4432_v28 = vld [vmem:[#allocation6 + $0x118] sm:$0xf0]  ;;  %v4972_v40 = vld [vmem:[#allocation6 + $0x1f4] sm:$0xf0] }
 0x154   :  { %2819 = vmatpush.bf16.msrb.mxu0 %v4311_v1  ;;  %2846 = vmatpush.bf16.msrb.mxu2 %v4447_v3  ;;  %v4403_v1 = vor.u32 %v4935_v50, %v4400_v35  ;;  %v4966_v49 = vld [vmem:[#allocation6 + $0x1c4] sm:$0xf0]  ;;  %v4964_v31 = vld [vmem:[#allocation6 + $0x1b4] sm:$0xf0] }
 0x155   :  { %2833 = vmatpush.bf16.msrb.mxu1 %v4375_v23  ;;  %v4392_v23 = vld [vmem:[#allocation6 + $0xc8] sm:$0xf0] }
 0x156   :  { %v4395_v26 = vor.u32 %v4933_v7, %v4392_v23  ;;  %v4440_v7 = vld [vmem:[#allocation6 + $0x128] sm:$0xf0] }
 0x157   :  { %v4443_v48 = vor.u32 %v4945_v20, %v4440_v7  ;;  %v4544_v7 = vld [vmem:[#allocation6 + $0x1f8] sm:$0xf0] }
 0x158   :  { %2820 = vmatpush.bf16.msrb.mxu0 %v4303_v30  ;;  %2847 = vmatpush.bf16.msrb.mxu2 %v4439_v17  ;;  %v4931_v30 = vld [vmem:[#allocation6 + $0xb4] sm:$0xf] }
 0x159   :  { %2834 = vmatpush.bf16.msrb.mxu1 %v4367_v44  ;;  %v4480_v44 = vld [vmem:[#allocation6 + $0x178] sm:$0xf0]  ;;  %v4387_v36 = vor.u32 %v4931_v30, %v4384_v33  ;;  %v4435_v30 = vor.u32 %v4943_v42, %v4432_v28  ;;  %v417_v42 = vperm.slane %v5377_v63, 3 }
 0x15a   :  { %v4483_v41 = vor.u32 %v4955_v9, %v4480_v44  ;;  %v4424_v9 = vld [vmem:[#allocation6 + $0x108] sm:$0xf0] }
 0x15c   :  { %2821 = vmatpush.bf16.msrb.mxu0 %v4295_v18  ;;  %2848 = vmatpush.bf16.msrb.mxu2 %v4431_v15  ;;  %v4911_v18 = vld [vmem:[#allocation6 + $0x14] sm:$0xf]  ;;  %v2197_v59 = vpop.f32.mrf.mxu0 }
 0x15d   :  { %2835 = vmatpush.bf16.msrb.mxu1 %v4359_v52  ;;  %v4368_v52 = vld [vmem:[#allocation6 + $0x98] sm:$0xf0]  ;;  %v4307_v60 = vor.u32 %v4911_v18, %v4304_v34 }
 0x15e   :  { %v4371_v0 = vor.u32 %v4927_v56, %v4368_v52  ;;  %v4526_v52 = vld [vmem:[#allocation6 + $0x1d0] sm:$0xf] }
 0x15f   :  { %2822 = vmatmul.bf16.vlgmr.msrb.gmra.mxu0 %v5419_v19  ;;  %v2211_v62 = vpop.f32.mrf.mxu1 }
 0x160   :  { %2870 = vmatpush.bf16.msra.mxu0 %v4355_v57  ;;  %2836 = vmatmul.bf16.vlgmr.msrb.gmra.mxu1 %v5421_v11  ;;  %v416_v57 = vperm.slane %v5377_v63, 2 }
 0x161   :  { %2884 = vmatpush.bf16.msra.mxu1 %v4419_v16  ;;  %2849 = vmatpush.bf16.msrb.mxu2 %v4423_v32  ;;  %v4951_v16 = vld [vmem:[#allocation6 + $0x154] sm:$0xf] }
 0x162   :  { %v4467_v5 = vor.u32 %v4951_v16, %v4464_v61  ;;  %v2170_v3 = vadd.f32 %v2169_v4, %v416_v57  ;;  %v2172_v17 = vadd.f32 %v2171_v53, %v416_v57  ;;  %v4534_v53 = vld [vmem:[#allocation6 + $0x1e0] sm:$0xf]  ;;  %v4968_v57 = vld [vmem:[#allocation6 + $0x1d4] sm:$0xf0] }
 0x163   :  { %v4527_v16 = vor.u32 %v4968_v57, %v4526_v52  ;;  %v4957_v52 = vld [vmem:[#allocation6 + $0x184] sm:$0xf]  ;;  %v4488_v57 = vld [vmem:[#allocation6 + $0x188] sm:$0xf0] }
 0x164   :  { %2871 = vmatpush.bf16.msra.mxu0 %v4347_v6  ;;  %v2185_v6 = vpop.f32.mrf.mxu3  ;;  %v2225_v50 = vpop.f32.mrf.mxu2  ;;  %v2184_v35 = vadd.f32 %v2183_v37, %v2170_v3 }
 0x165   :  { %2885 = vmatpush.bf16.msra.mxu1 %v4411_v12  ;;  %2898 = vmatpush.bf16.msra.mxu2 %v4483_v41  ;;  %v4456_v12 = vld [vmem:[#allocation6 + $0x148] sm:$0xf0]  ;;  %v2199_v23 = vpop.f32.mrf.mxu0  ;;  %v2186_v24 = vadd.f32 %v2185_v6, %v2172_v17 }
 0x166   :  { %v4459_v13 = vor.u32 %v4949_v46, %v4456_v12  ;;  %v4502_v46 = vld [vmem:[#allocation6 + $0x1a0] sm:$0xf]  ;;  %v4962_v12 = vld [vmem:[#allocation6 + $0x1a4] sm:$0xf0] }
 0x167   :  { %v2213_v4 = vpop.f32.mrf.mxu1 }
 0x168   :  { %2872 = vmatpush.bf16.msra.mxu0 %v4339_v14  ;;  %v4947_v14 = vld [vmem:[#allocation6 + $0x134] sm:$0xf] }
 0x169   :  { %2886 = vmatpush.bf16.msra.mxu1 %v4403_v1  ;;  %2899 = vmatpush.bf16.msra.mxu2 %v4475_v55  ;;  %v4448_v1 = vld [vmem:[#allocation6 + $0x138] sm:$0xf0] }
 0x16a   :  { %v4451_v22 = vor.u32 %v4947_v14, %v4448_v1  ;;  %v4486_v14 = vld [vmem:[#allocation6 + $0x180] sm:$0xf]  ;;  %v4958_v1 = vld [vmem:[#allocation6 + $0x184] sm:$0xf0] }
 0x16b   :  { %v4487_v20 = vor.u32 %v4958_v1, %v4486_v14 }
 0x16c   :  { %2873 = vmatpush.bf16.msra.mxu0 %v4331_v21  ;;  %v2198_v21 = vadd.f32 %v2197_v59, %v2184_v35  ;;  %v2239_v39 = vpop.f32.mrf.mxu3  ;;  %v2227_v29 = vpop.f32.mrf.mxu2  ;;  %v4960_v35 = vld [vmem:[#allocation6 + $0x194] sm:$0xf0] }
 0x16d   :  { %2887 = vmatpush.bf16.msra.mxu1 %v4395_v26  ;;  %2900 = vmatpush.bf16.msra.mxu2 %v4467_v5  ;;  %v2200_v26 = vadd.f32 %v2199_v23, %v2186_v24  ;;  %v4510_v5 = vld [vmem:[#allocation6 + $0x1b0] sm:$0xf] }
 0x16e   :  { %v2212_v15 = vadd.f32 %v2211_v62, %v2198_v21 }
 0x16f   :  { %v2214_v44 = vadd.f32 %v2213_v4, %v2200_v26  ;;  %v4969_v4 = vld [vmem:[#allocation6 + $0x1e4] sm:$0xf]  ;;  %v4528_v26 = vld [vmem:[#allocation6 + $0x1d8] sm:$0xf0] }
 0x170   :  { %2874 = vmatpush.bf16.msra.mxu0 %v4323_v54  ;;  %v4941_v54 = vld [vmem:[#allocation6 + $0x104] sm:$0xf] }
 0x171   :  { %2888 = vmatpush.bf16.msra.mxu1 %v4387_v36  ;;  %2901 = vmatpush.bf16.msra.mxu2 %v4459_v13  ;;  %v4427_v37 = vor.u32 %v4941_v54, %v4424_v9  ;;  %v2228_v36 = vadd.f32 %v2227_v29, %v2214_v44  ;;  %v4963_v44 = vld [vmem:[#allocation6 + $0x1b4] sm:$0xf] }
 0x174   :  { %2875 = vmatpush.bf16.msra.mxu0 %v4315_v45  ;;  %v2241_v38 = vpop.f32.mrf.mxu3 }
 0x175   :  { %2889 = vmatpush.bf16.msra.mxu1 %v4379_v25  ;;  %2902 = vmatpush.bf16.msra.mxu2 %v4451_v22  ;;  %v2242_v45 = vadd.f32 %v2241_v38, %v2228_v36  ;;  %v4970_v25 = vld [vmem:[#allocation6 + $0x1e4] sm:$0xf0]  ;;  %v4971_v22 = vld [vmem:[#allocation6 + $0x1f4] sm:$0xf] }
 0x176   :  { %v4535_v34 = vor.u32 %v4970_v25, %v4534_v53  ;;  %v4547_v23 = vor.u32 %v4971_v22, %v4544_v7  ;;  %v4959_v53 = vld [vmem:[#allocation6 + $0x194] sm:$0xf]  ;;  %v4496_v25 = vld [vmem:[#allocation6 + $0x198] sm:$0xf0]  ;;  %v4978_v7 = vld [vmem:[#allocation9 + $0x28] sm:$0xff] }
 0x177   :  { %v4979_v22 = vld [vmem:[#allocation9 + $0x30] sm:$0xff] }
 0x178   :  { %2876 = vmatpush.bf16.msra.mxu0 %v4307_v60 }
 0x179   :  { %2890 = vmatpush.bf16.msra.mxu1 %v4371_v0  ;;  %2903 = vmatpush.bf16.msra.mxu2 %v4443_v48  ;;  %v4518_v0 = vld [vmem:[#allocation6 + $0x1c0] sm:$0xf]  ;;  %v4536_v48 = vld [vmem:[#allocation6 + $0x1e8] sm:$0xf0] }
 0x17a   :  { %v4519_v2 = vor.u32 %v4966_v49, %v4518_v0  ;;  %v4539_v21 = vor.u32 %v4969_v4, %v4536_v48  ;;  %v4976_v4 = vld [vmem:[#allocation9 + $0x18] sm:$0xff] }
 0x17b   :  { %v4988_v48 = vld [vmem:[#allocation9 + $0x78] sm:$0xff] }
 0x17c   :  { %2877 = vmatpush.bf16.msra.mxu0 %v4299_v8  ;;  %v2253_v33 = vpop.f32.mrf.mxu0  ;;  %v4511_v8 = vor.u32 %v4964_v31, %v4510_v5 }
 0x17d   :  { %2891 = vmatpush.bf16.msra.mxu1 %v4363_v27  ;;  %2904 = vmatpush.bf16.msra.mxu2 %v4435_v30  ;;  %v4503_v27 = vor.u32 %v4962_v12, %v4502_v46  ;;  %v4965_v30 = vld [vmem:[#allocation6 + $0x1c4] sm:$0xf] }
 0x17f   :  { %2878 = vmatmul.bf16.vlgmr.msra.gmra.mxu0 %v5419_v19  ;;  %v2267_v32 = vpop.f32.mrf.mxu1  ;;  %v2226_v19 = vadd.f32 %v2225_v50, %v2212_v15  ;;  %v4494_v50 = vld [vmem:[#allocation6 + $0x190] sm:$0xf]  ;;  %v4967_v15 = vld [vmem:[#allocation6 + $0x1d4] sm:$0xf] }
 0x180   :  { %2892 = vmatmul.bf16.vlgmr.msra.gmra.mxu1 %v5421_v11  ;;  %v4542_v11 = vld [vmem:[#allocation6 + $0x1f0] sm:$0xf]  ;;  %v4495_v17 = vor.u32 %v4960_v35, %v4494_v50  ;;  %v4531_v28 = vor.u32 %v4967_v15, %v4528_v26  ;;  %v4973_v26 = vld [vmem:[#allocation9] sm:$0xff] }
 0x181   :  { %2905 = vmatpush.bf16.msra.mxu2 %v4427_v37  ;;  %v2240_v41 = vadd.f32 %v2239_v39, %v2226_v19  ;;  %v4543_v43 = vor.u32 %v4972_v40, %v4542_v11  ;;  %v4512_v37 = vld [vmem:[#allocation6 + $0x1b8] sm:$0xf0]  ;;  %v4961_v40 = vld [vmem:[#allocation6 + $0x1a4] sm:$0xf]  ;;  %3078 = vmatpush.bf16.msrb.mxu1 %v4988_v48  ;;  %v4986_v15 = vld [vmem:[#allocation9 + $0x68] sm:$0xff] }
 0x182   :  { %v4515_v11 = vor.u32 %v4963_v44, %v4512_v37  ;;  %v4981_v44 = vld [vmem:[#allocation9 + $0x40] sm:$0xff] }
 0x183   :  { %v2254_v47 = vadd.f32 %v2253_v33, %v2240_v41  ;;  %2856 = vmatpush.bf16.msrb.mxu3 %v4543_v43  ;;  %v4520_v33 = vld [vmem:[#allocation6 + $0x1c8] sm:$0xf0] }
 0x184   :  { %v2281_v58 = vpop.f32.mrf.mxu2  ;;  %v2255_v51 = vpop.f32.mrf.mxu0  ;;  %v4523_v54 = vor.u32 %v4965_v30, %v4520_v33  ;;  %v4504_v41 = vld [vmem:[#allocation6 + $0x1a8] sm:$0xf0]  ;;  %v4983_v30 = vld [vmem:[#allocation9 + $0x50] sm:$0xff] }
 0x185   :  { %v2256_v18 = vadd.f32 %v2255_v51, %v2242_v45  ;;  %v2268_v56 = vadd.f32 %v2267_v32, %v2254_v47  ;;  %v4507_v63 = vor.u32 %v4961_v40, %v4504_v41 }
 0x186   :  { %v2295_v13 = vpop.f32.mrf.mxu3 }
 0x187   :  { %v2269_v55 = vpop.f32.mrf.mxu1  ;;  %2857 = vmatpush.bf16.msrb.mxu3 %v4535_v34  ;;  %v2282_v59 = vadd.f32 %v2281_v58, %v2268_v56  ;;  %v2296_v32 = vadd.f32 %v2295_v13, %v417_v42  ;;  %v4499_v56 = vor.u32 %v4959_v53, %v4496_v25 }
 0x188   :  { %v2270_v60 = vadd.f32 %v2269_v55, %v2256_v18 }
 0x189   :  { %v2414_v10 = vmax.f32 %v2282_v59, 0.0 }
 0x18b   :  { %2858 = vmatpush.bf16.msrb.mxu3 %v4527_v16 }
 0x18c   :  { %v2283_v61 = vpop.f32.mrf.mxu2 }
 0x18d   :  { %v2284_v62 = vadd.f32 %v2283_v61, %v2270_v60  ;;  %v4491_v60 = vor.u32 %v4957_v52, %v4488_v57 }
 0x18e   :  { %v2297_v24 = vpop.f32.mrf.mxu3 }
 0x18f   :  { %v2418_v6 = vmax.f32 %v2284_v62, 0.0  ;;  %2859 = vmatpush.bf16.msrb.mxu3 %v4519_v2  ;;  %v2298_v43 = vadd.f32 %v2297_v24, %v417_v42  ;;  %v4975_v24 = vld [vmem:[#allocation9 + $0x10] sm:$0xff]  ;;  %v4985_v42 = vld [vmem:[#allocation9 + $0x60] sm:$0xff] }
 0x191   :  { %v2422_v3 = vpack.c.bf16 %v2418_v6, %v2414_v10 }
 0x193   :  { %2850 = vmatmul.bf16.vlgmr.msrb.gmra.mxu2 %v2422_v3  ;;  %2860 = vmatpush.bf16.msrb.mxu3 %v4511_v8 }
 0x197   :  { %2861 = vmatpush.bf16.msrb.mxu3 %v4503_v27 }
 0x19b   :  { %2862 = vmatpush.bf16.msrb.mxu3 %v4495_v17 }
 0x19c   :  { %v2309_v39 = vpop.f32.mrf.mxu0 }
 0x19d   :  { %v2310_v36 = vadd.f32 %v2309_v39, %v2296_v32  ;;  %v4974_v39 = vld [vmem:[#allocation9 + $0x8] sm:$0xff] }
 0x19e   :  { %v4982_v32 = vld [vmem:[#allocation9 + $0x48] sm:$0xff] }
 0x19f   :  { %2863 = vmatpush.bf16.msrb.mxu3 %v4487_v20  ;;  %v2323_v29 = vpop.f32.mrf.mxu1  ;;  %v4980_v20 = vld [vmem:[#allocation9 + $0x38] sm:$0xff] }
 0x1a0   :  { %v2324_v45 = vadd.f32 %v2323_v29, %v2310_v36  ;;  %3064 = vmatpush.bf16.msrb.mxu0 %v4980_v20 }
 0x1a3   :  { %2912 = vmatpush.bf16.msra.mxu3 %v4547_v23  ;;  %2906 = vmatmul.bf16.vlgmr.msra.gmra.mxu2 %v2422_v3  ;;  %v4977_v23 = vld [vmem:[#allocation9 + $0x20] sm:$0xff] }
 0x1a4   :  { %v2337_v9 = vpop.f32.mrf.mxu2  ;;  %v2311_v38 = vpop.f32.mrf.mxu0  ;;  %3065 = vmatpush.bf16.msrb.mxu0 %v4979_v22 }
 0x1a5   :  { %v2312_v47 = vadd.f32 %v2311_v38, %v2298_v43  ;;  %v2338_v18 = vadd.f32 %v2337_v9, %v2324_v45 }
 0x1a6   :  { %v2351_v19 = vpop.f32.mrf.mxu3 }
 0x1a7   :  { %2913 = vmatpush.bf16.msra.mxu3 %v4539_v21  ;;  %v2325_v58 = vpop.f32.mrf.mxu1  ;;  %v2352_v61 = vadd.f32 %v2351_v19, %v2338_v18  ;;  %v4987_v21 = vld [vmem:[#allocation9 + $0x70] sm:$0xff] }
 0x1a8   :  { %v2326_v59 = vadd.f32 %v2325_v58, %v2312_v47  ;;  %3066 = vmatpush.bf16.msrb.mxu0 %v4978_v7  ;;  %3079 = vmatpush.bf16.msrb.mxu1 %v4987_v21 }
 0x1ab   :  { %2914 = vmatpush.bf16.msra.mxu3 %v4531_v28  ;;  %v4984_v28 = vld [vmem:[#allocation9 + $0x58] sm:$0xff] }
 0x1ac   :  { %v2339_v51 = vpop.f32.mrf.mxu2  ;;  %3067 = vmatpush.bf16.msrb.mxu0 %v4977_v23  ;;  %3080 = vmatpush.bf16.msrb.mxu1 %v4986_v15 }
 0x1ad   :  { %v2340_v62 = vadd.f32 %v2339_v51, %v2326_v59 }
 0x1ae   :  { %v2353_v34 = vpop.f32.mrf.mxu3 }
 0x1af   :  { %2915 = vmatpush.bf16.msra.mxu3 %v4523_v54  ;;  %v2354_v2 = vadd.f32 %v2353_v34, %v2340_v62  ;;  %v2488_v54 = vld [vmem:[#allocation7] sm:$0x3] }
 0x1b0   :  { %3068 = vmatpush.bf16.msrb.mxu0 %v4976_v4  ;;  %3081 = vmatpush.bf16.msrb.mxu1 %v4985_v42  ;;  %v2490_v19 = vperm.slane %v2488_v54, 0 }
 0x1b3   :  { %2916 = vmatpush.bf16.msra.mxu3 %v4515_v11 }
 0x1b4   :  { %3069 = vmatpush.bf16.msrb.mxu0 %v4975_v24  ;;  %3082 = vmatpush.bf16.msrb.mxu1 %v4984_v28 }
 0x1b7   :  { %2917 = vmatpush.bf16.msra.mxu3 %v4507_v63 }
 0x1b8   :  { %3070 = vmatpush.bf16.msrb.mxu0 %v4974_v39  ;;  %3083 = vmatpush.bf16.msrb.mxu1 %v4983_v30 }
 0x1bb   :  { %2918 = vmatpush.bf16.msra.mxu3 %v4499_v56 }
 0x1bc   :  { %v2365_v55 = vpop.f32.mrf.mxu0  ;;  %3071 = vmatpush.bf16.msrb.mxu0 %v4973_v26  ;;  %3084 = vmatpush.bf16.msrb.mxu1 %v4982_v32 }
 0x1bd   :  { %v2366_v0 = vadd.f32 %v2365_v55, %v2352_v61  ;;  %v2491_v55 = vperm.slane %v2488_v54, 1 }
 0x1bf   :  { %v2379_v16 = vpop.f32.mrf.mxu1  ;;  %2919 = vmatpush.bf16.msra.mxu3 %v4491_v60 }
 0x1c0   :  { %v2380_v10 = vadd.f32 %v2379_v16, %v2366_v0  ;;  %3085 = vmatpush.bf16.msrb.mxu1 %v4981_v44 }
 0x1c4   :  { %v2393_v49 = vpop.f32.mrf.mxu2  ;;  %v2367_v31 = vpop.f32.mrf.mxu0 }
 0x1c5   :  { %v2368_v6 = vadd.f32 %v2367_v31, %v2354_v2  ;;  %v2394_v3 = vadd.f32 %v2393_v49, %v2380_v10 }
 0x1c6   :  { %v2407_v5 = vpop.f32.mrf.mxu3 }
 0x1c7   :  { %v2381_v8 = vpop.f32.mrf.mxu1  ;;  %v2408_v27 = vadd.f32 %v2407_v5, %v2394_v3 }
 0x1c8   :  { %v2382_v46 = vadd.f32 %v2381_v8, %v2368_v6 }
 0x1c9   :  { %v2415_v17 = vmax.f32 %v2408_v27, 0.0 }
 0x1cc   :  { %v2395_v12 = vpop.f32.mrf.mxu2 }
 0x1cd   :  { %v2396_v13 = vadd.f32 %v2395_v12, %v2382_v46 }
 0x1ce   :  { %v2409_v50 = vpop.f32.mrf.mxu3 }
 0x1cf   :  { %v2410_v35 = vadd.f32 %v2409_v50, %v2396_v13  ;;  %v5006_v50 = vld [vmem:[#allocation10] ss:$0 sm:$0xff] }
 0x1d1   :  { %v2419_v14 = vmax.f32 %v2410_v35, 0.0 }
 0x1d3   :  { %v2423_v1 = vpack.c.bf16 %v2419_v14, %v2415_v17 }
 0x1d5   :  { %2864 = vmatmul.bf16.vlgmr.msrb.gmra.mxu3 %v2423_v1 }
 0x1dc   :  { %v2823_v29 = vpop.f32.mrf.mxu0 }
 0x1dd   :  { %v2837_v9 = vpop.f32.mrf.mxu1  ;;  %v2824_v36 = vadd.f32 %v2823_v29, %v2490_v19 }
 0x1df   :  { %v2838_v43 = vadd.f32 %v2837_v9, %v2824_v36 }
 0x1e4   :  { %v2825_v37 = vpop.f32.mrf.mxu0 }
 0x1e5   :  { %2920 = vmatmul.bf16.vlgmr.msra.gmra.mxu3 %v2423_v1  ;;  %v2826_v40 = vadd.f32 %v2825_v37, %v2490_v19  ;;  %v2839_v41 = vpop.f32.mrf.mxu1 }
 0x1e7   :  { %v2840_v58 = vadd.f32 %v2839_v41, %v2826_v40 }
 0x1fc   :  { %v2879_v63 = vpop.f32.mrf.mxu0 }
 0x1fd   :  { %v2893_v18 = vpop.f32.mrf.mxu1  ;;  %v2880_v60 = vadd.f32 %v2879_v63, %v2491_v55 }
 0x1ff   :  { %v2894_v62 = vadd.f32 %v2893_v18, %v2880_v60 }
 0x204   :  { %v2881_v59 = vpop.f32.mrf.mxu0 }
 0x205   :  { %v2882_v61 = vadd.f32 %v2881_v59, %v2491_v55  ;;  %v2895_v0 = vpop.f32.mrf.mxu1 }
 0x207   :  { %v2896_v2 = vadd.f32 %v2895_v0, %v2882_v61 }
 0x216   :  { %v2851_v33 = vpop.f32.mrf.mxu2 }
 0x217   :  { %v2852_v45 = vadd.f32 %v2851_v33, %v2838_v43 }
 0x21e   :  { %v2853_v38 = vpop.f32.mrf.mxu2 }
 0x21f   :  { %v2854_v47 = vadd.f32 %v2853_v38, %v2840_v58 }
 0x226   :  { %v2907_v34 = vpop.f32.mrf.mxu2 }
 0x227   :  { %v2908_v5 = vadd.f32 %v2907_v34, %v2894_v62 }
 0x22e   :  { %v2909_v49 = vpop.f32.mrf.mxu2 }
 0x22f   :  { %v2910_v31 = vadd.f32 %v2909_v49, %v2896_v2 }
 0x258   :  { %v2865_v11 = vpop.f32.mrf.mxu3 }
 0x259   :  { %v2866_v51 = vadd.f32 %v2865_v11, %v2852_v45 }
 0x25b   :  { %v2926_v56 = vmax.f32 %v2866_v51, 0.0 }
 0x260   :  { %v2867_v53 = vpop.f32.mrf.mxu3 }
 0x261   :  { %v2868_v25 = vadd.f32 %v2867_v53, %v2854_v47 }
 0x263   :  { %v2928_v52 = vmax.f32 %v2868_v25, 0.0 }
 0x265   :  { %v2930_v57 = vpack.c.bf16 %v2928_v52, %v2926_v56 }
 0x267   :  { %3072 = vmatmul.bf16.vlgmr.msrb.gmra.mxu0 %v2930_v57 }
 0x268   :  { %v2921_v16 = vpop.f32.mrf.mxu3 }
 0x269   :  { %v2922_v10 = vadd.f32 %v2921_v16, %v2908_v5 }
 0x26b   :  { %v2927_v8 = vmax.f32 %v2922_v10, 0.0 }
 0x270   :  { %v2923_v6 = vpop.f32.mrf.mxu3 }
 0x271   :  { %v2924_v3 = vadd.f32 %v2923_v6, %v2910_v31 }
 0x273   :  { %v2929_v46 = vmax.f32 %v2924_v3, 0.0 }
 0x275   :  { %v2931_v12 = vpack.c.bf16 %v2929_v46, %v2927_v8 }
 0x277   :  { %3086 = vmatmul.bf16.vlgmr.msrb.gmra.mxu1 %v2931_v12 }
 0x2e4   :  { %v3073_v27 = vpop.f32.mrf.mxu0 }
 0x2e5   :  { %v3074_v17 = vadd.f32 %v5006_v50, %v3073_v27 }
 0x2ec   :  { %v3075_v35 = vpop.f32.mrf.mxu0 }
 0x2ed   :  { %v3076_v14 = vadd.f32 %v5006_v50, %v3075_v35 }
 0x2f4   :  { %v3087_v13 = vpop.f32.mrf.mxu1 }
 0x2f5   :  { %v3088_v20 = vadd.f32 %v3087_v13, %v3074_v17 }
 0x2fc   :  { %v3089_v1 = vpop.f32.mrf.mxu1 }
 0x2fd   :  { %v3090_v22 = vadd.f32 %v3089_v1, %v3076_v14 }
 0x2ff   :  { %v4992_v7 = vpack.c.bf16 %v3090_v22, %v3088_v20 }
 0x301   :  { %4993 = vst [vmem:[%s5439_s7] sm:$0xff] %v4992_v7  }
 0x302   :  { %3100 = vsyncpa [#allocation3], 1 }
 0x303   :  { %3101 = vsyncpa [#allocation5], 1 }
 0x304   :  { %3102 = vsyncpa [#allocation8], 1 }
 0x305   :  { %3103 = vsyncpa [#allocation11], 1 }

</bundles_post_ra>
